<compile_context>
chip_gen: v7x
topology: tpu7x:2x2x1
jax: 0.10.0
libtpu: 0.0.40
codegen_flags: <defaults>
</compile_context>

<pallas_src>
import functools

import jax
import jax.numpy as jnp
from jax import lax
from jax.experimental import pallas as pl
from jax.experimental.pallas import tpu as pltpu

EPS = 1e-5


def _round_up(v, m):
    return ((v + m - 1) // m) * m


@functools.lru_cache(maxsize=None)
def _device_kind():
    try:
        return jax.devices()[0].device_kind.lower()
    except Exception:  # pragma: no cover - defensive
        return ""


def _grid_policy(n):
    """Pick (images-per-step NB, dimension_semantics) for the batch grid axis."""
    kind = _device_kind()
    multi_tc = any(t in kind for t in ("v7", "v4", "v5p"))  # 2 TensorCores/chip
    want_steps = 2 if multi_tc else 1
    nb = max(1, n // want_steps)
    while n % nb:
        nb -= 1
    if "v7" in kind and hasattr(pltpu, "CORE_PARALLEL"):
        sem = (pltpu.CORE_PARALLEL,)      # force cross-TC sharding of the batch axis
    else:
        sem = (pltpu.PARALLEL,)
    return nb, sem


# ----------------------------------------------------------------------------
# Pallas kernels
# ----------------------------------------------------------------------------
def _conv3x3_kernel(*refs, h, w, nb, cin, count, fuse_prologue):
    """[fold BN of prev layer + ReLU prologue ->] 3x3 conv + BN statistics.

    NB images per grid step, channels in sublanes / pixels in lanes:
      x_ref:         (NB, Cin, H*W)        previous conv output (or input image)
      stats_in_ref:  (steps, Cin, 2)       raw prev-layer stats   [fused only]
      gamma_ref:     (Cin, 1)              prev-layer BN gamma    [fused only]
      beta_ref:      (Cin, 1)              prev-layer BN beta     [fused only]
      w_ref:         (Cout, 9*Cin_p)       weights, columns (dh, dw, cin_p)
      y_ref:         (NB, Cout, H*W)       conv output (pre-BN), lane-dense
      stats_out_ref: (1, Cout, 2)          per-step per-channel [sum, sumsq]
      xpad_ref:      (NB, Cin_p, H*W+2W+2) VMEM scratch: flat zero-padded image
      col_ref:       (9*Cin_p, NB*H*W)     VMEM scratch: transposed im2col
    """
    if fuse_prologue:
        (x_ref, stats_in_ref, gamma_ref, beta_ref, w_ref,
         y_ref, stats_out_ref, xpad_ref, col_ref) = refs
    else:
        (x_ref, w_ref, y_ref, stats_out_ref, xpad_ref, col_ref) = refs
        stats_in_ref = gamma_ref = beta_ref = None

    hw = h * w
    pad = w + 1
    cin_p = xpad_ref.shape[1]

    # --- prologue: fold previous layer's train-mode BN into scale/shift -----
    if fuse_prologue:
        inv = 1.0 / count
        tot = jnp.sum(stats_in_ref[...], axis=0)                  # (Cin, 2)
        mean = tot[:, 0:1] * inv                                  # (Cin, 1)
        var = jnp.maximum(tot[:, 1:2] * inv - mean * mean, 0.0)   # biased var
        scale = gamma_ref[...] * lax.rsqrt(var + EPS)
        shift = beta_ref[...] - mean * scale

    # Width-boundary masks (row wrap-around of the flattened layout).
    col_in_row = lax.broadcasted_iota(jnp.int32, (cin_p, hw), 1) % w
    m_left = col_in_row >= 1           # tap reads column  c-1
    m_right = col_in_row <= w - 2      # tap reads column  c+1

    zpad = jnp.zeros((cin_p, pad), jnp.float32)

    for b in range(nb):
        xb = x_ref[b]                                             # (Cin, H*W)
        if fuse_prologue:
            # Previous layer's BN + ReLU on the interior only; the pad lanes
            # below stay exactly zero, matching PyTorch's zero padding of the
            # *activated* tensor.
            xb = jnp.maximum(xb * scale + shift, 0.0)
        if cin_p > cin:
            # Pad channels so every per-tap col store is 8-sublane aligned.
            xb = jnp.concatenate(
                [xb, jnp.zeros((cin_p - cin, hw), jnp.float32)], axis=0)

        # Zero only the leading/trailing pad lanes; interior written once.
        xpad_ref[b, :, 0:pad] = zpad
        xpad_ref[b, :, pad + hw:] = zpad
        xpad_ref[b, :, pad:pad + hw] = xb

        # Transposed im2col for this image: lane-dense, sublane-aligned rows.
        for dh in range(3):
            for dw in range(3):
                t = dh * 3 + dw
                off = dh * w + dw
                patch = xpad_ref[b, :, off:off + hw]              # (Cin_p, H*W)
                if dw == 0:
                    patch = jnp.where(m_left, patch, 0.0)
                elif dw == 2:
                    patch = jnp.where(m_right, patch, 0.0)
                col_ref[t * cin_p:(t + 1) * cin_p,
                        b * hw:(b + 1) * hw] = patch

    # Single wide MXU matmul over all NB images:
    #   (Cout, 9*Cin_p) @ (9*Cin_p, NB*H*W) -> (Cout, NB*H*W)
    # Conv bias omitted: cancelled exactly by train-mode BatchNorm's mean.
    y = jnp.dot(w_ref[...], col_ref[...], preferred_element_type=jnp.float32)

    for b in range(nb):
        y_ref[b] = y[:, b * hw:(b + 1) * hw]       # unmasked lane-dense stores

    # Per-step per-channel statistics (summed over the NB images in-step).
    stats_out_ref[0, :, 0:1] = jnp.sum(y, axis=1, keepdims=True)
    stats_out_ref[0, :, 1:2] = jnp.sum(y * y, axis=1, keepdims=True)


def _bn_relu_kernel(x_ref, stats_ref, gamma_ref, beta_ref, o_ref, *, count):
    """In-kernel BN fold (from raw stats) + ReLU on a (NB, C, H*W) block."""
    inv = 1.0 / count
    tot = jnp.sum(stats_ref[...], axis=0)                         # (C, 2)
    mean = tot[:, 0:1] * inv
    var = jnp.maximum(tot[:, 1:2] * inv - mean * mean, 0.0)
    scale = gamma_ref[...] * lax.rsqrt(var + EPS)                 # (C, 1)
    shift = beta_ref[...] - mean * scale
    o_ref[...] = jnp.maximum(x_ref[...] * scale[None] + shift[None], 0.0)


# ----------------------------------------------------------------------------
# Wrappers around pallas_call
# ----------------------------------------------------------------------------
def _conv_layer(x_flat, wmat, h, w, nb, sem, prev=None):
    """3x3 conv over (N, Cin, H*W); optionally folds the previous BN+ReLU.

    Returns (y, stats): y (N, Cout, H*W) pre-BN conv output,
    stats (steps, Cout, 2) per-step [sum, sumsq] per channel.
    """
    n, cin, hw = x_flat.shape
    cout = wmat.shape[0]
    cin_p = wmat.shape[1] // 9
    steps = n // nb
    fuse = prev is not None

    kernel = functools.partial(
        _conv3x3_kernel, h=h, w=w, nb=nb, cin=cin,
        count=float(n * hw), fuse_prologue=fuse)

    in_specs = [pl.BlockSpec((nb, cin, hw), lambda i: (i, 0, 0))]
    inputs = [x_flat]
    if fuse:
        stats_prev, gamma_prev, beta_prev = prev
        in_specs += [pl.BlockSpec(stats_prev.shape, lambda i: (0, 0, 0)),
                     pl.BlockSpec((cin, 1), lambda i: (0, 0)),
                     pl.BlockSpec((cin, 1), lambda i: (0, 0))]
        inputs += [stats_prev,
                   gamma_prev.reshape(cin, 1),
                   beta_prev.reshape(cin, 1)]
    in_specs += [pl.BlockSpec((cout, 9 * cin_p), lambda i: (0, 0))]
    inputs += [wmat]

    return pl.pallas_call(
        kernel,
        out_shape=(jax.ShapeDtypeStruct((n, cout, hw), jnp.float32),
                   jax.ShapeDtypeStruct((steps, cout, 2), jnp.float32)),
        grid=(steps,),
        in_specs=in_specs,
        out_specs=(pl.BlockSpec((nb, cout, hw), lambda i: (i, 0, 0)),
                   pl.BlockSpec((1, cout, 2), lambda i: (i, 0, 0))),
        scratch_shapes=[
            pltpu.VMEM((nb, cin_p, hw + 2 * (w + 1)), jnp.float32),
            pltpu.VMEM((9 * cin_p, nb * hw), jnp.float32)],
        compiler_params=pltpu.CompilerParams(dimension_semantics=sem),
    )(*inputs)


def _bn_relu(y_flat, stats, gamma, beta, nb, sem):
    n, c, hw = y_flat.shape
    steps = n // nb
    kernel = functools.partial(_bn_relu_kernel, count=float(n * hw))
    return pl.pallas_call(
        kernel,
        out_shape=jax.ShapeDtypeStruct((n, c, hw), jnp.float32),
        grid=(steps,),
        in_specs=[pl.BlockSpec((nb, c, hw), lambda i: (i, 0, 0)),
                  pl.BlockSpec(stats.shape, lambda i: (0, 0, 0)),
                  pl.BlockSpec((c, 1), lambda i: (0, 0)),
                  pl.BlockSpec((c, 1), lambda i: (0, 0))],
        out_specs=pl.BlockSpec((nb, c, hw), lambda i: (i, 0, 0)),
        input_output_aliases={0: 0},      # write in place over y2
        compiler_params=pltpu.CompilerParams(dimension_semantics=sem),
    )(y_flat, stats, gamma.reshape(c, 1), beta.reshape(c, 1))


def _pack_weights(w_oihw, cin_p):
    """OIHW (Cout, Cin, 3, 3) -> (Cout, 9*Cin_p), columns ordered (dh, dw, cin),
    with the input-channel axis zero-padded to Cin_p (sublane alignment)."""
    cout, cin, kh, kw = w_oihw.shape
    wt = jnp.transpose(w_oihw, (0, 2, 3, 1))           # (Cout, 3, 3, Cin)
    if cin_p != cin:
        wt = jnp.pad(wt, ((0, 0), (0, 0), (0, 0), (0, cin_p - cin)))
    return wt.reshape(cout, kh * kw * cin_p)


def conv_block_forward(x_nchw, params):
    """Forward pass of conv_block.  Input/output in PyTorch NCHW layout."""
    n, cin, h, w = x_nchw.shape
    cout = params["w1"].shape[0]
    hw = h * w
    nb, sem = _grid_policy(n)

    x = x_nchw.reshape(n, cin, hw)      # free: NCHW is already channels-major

    cin_p1 = _round_up(cin, 8)
    cin_p2 = _round_up(cout, 8)
    # Conv biases intentionally unused: train-mode BatchNorm cancels them.
    wm1 = _pack_weights(params["w1"], cin_p1)
    wm2 = _pack_weights(params["w2"], cin_p2)

    # Layer 1: conv only (BN1 + ReLU1 are fused into layer-2's prologue).
    y1, st1 = _conv_layer(x, wm1, h, w, nb, sem)

    # Layer 2: in-kernel BN1 fold + ReLU1 prologue, then conv.
    y2, st2 = _conv_layer(y1, wm2, h, w, nb, sem,
                          prev=(st1, params["gamma1"], params["beta1"]))

    # Final BN2 + ReLU2: stats folded in-kernel, written in place over y2.
    out = _bn_relu(y2, st2, params["gamma2"], params["beta2"], nb, sem)
    return out.reshape(n, cout, h, w)


# ----------------------------------------------------------------------------
# Pure-JAX reference (for correctness check; keeps the conv biases)
# ----------------------------------------------------------------------------
def conv_block_reference(x_nchw, params):
    def conv(xi, wgt, b):
        y = lax.conv_general_dilated(
            xi, wgt, window_strides=(1, 1), padding=((1, 1), (1, 1)),
            dimension_numbers=("NCHW", "OIHW", "NCHW"))
        return y + b[None, :, None, None]

    def bn_relu(y, g, bt):
        m = jnp.mean(y, axis=(0, 2, 3), keepdims=True)
        v = jnp.var(y, axis=(0, 2, 3), keepdims=True)
        yhat = (y - m) * lax.rsqrt(v + EPS)
        return jnp.maximum(g[None, :, None, None] * yhat
                           + bt[None, :, None, None], 0.0)

    y = bn_relu(conv(x_nchw, params["w1"], params["b1"]),
                params["gamma1"], params["beta1"])
    y = bn_relu(conv(y, params["w2"], params["b2"]),
                params["gamma2"], params["beta2"])
    return y


# ----------------------------------------------------------------------------
def make_params(key, ch_in, ch_out):
    ks = jax.random.split(key, 8)
    # PyTorch-style parameter layout: OIHW conv weights + per-channel BN affine.
    w1 = 0.2 * jax.random.normal(ks[0], (ch_out, ch_in, 3, 3), jnp.float32)
    b1 = 0.1 * jax.random.normal(ks[1], (ch_out,), jnp.float32)
    g1 = 1.0 + 0.1 * jax.random.normal(ks[2], (ch_out,), jnp.float32)
    be1 = 0.1 * jax.random.normal(ks[3], (ch_out,), jnp.float32)
    w2 = 0.2 * jax.random.normal(ks[4], (ch_out, ch_out, 3, 3), jnp.float32)
    b2 = 0.1 * jax.random.normal(ks[5], (ch_out,), jnp.float32)
    g2 = 1.0 + 0.1 * jax.random.normal(ks[6], (ch_out,), jnp.float32)
    be2 = 0.1 * jax.random.normal(ks[7], (ch_out,), jnp.float32)
    return dict(w1=w1, b1=b1, gamma1=g1, beta1=be1,
                w2=w2, b2=b2, gamma2=g2, beta2=be2)


if __name__ == "__main__":
    key = jax.random.PRNGKey(0)
    k_x, k_p = jax.random.split(key)

    N, CH_IN, CH_OUT, H, W = 2, 4, 8, 16, 16
    x = jax.random.normal(k_x, (N, CH_IN, H, W), jnp.float32)   # NCHW, like PyTorch
    params = make_params(k_p, CH_IN, CH_OUT)

    fwd = jax.jit(functools.partial(conv_block_forward, params=params))
    out = jax.block_until_ready(fwd(x))

    ref = conv_block_reference(x, params)
    assert out.shape == (N, CH_OUT, H, W)
    assert jnp.allclose(out, ref, atol=1e-3, rtol=1e-3), "mismatch vs reference"

    print("KERNEL_OK")
</pallas_src>

<mosaic_0001>
module attributes {stable_mosaic.version = 11 : i64} {
  func.func @_bn_relu_kernel(%arg0: i32, %arg1: memref<2x8x256xf32, #tpu.memory_space<vmem>>, %arg2: memref<1x8x2xf32, #tpu.memory_space<vmem>>, %arg3: memref<8x1xf32, #tpu.memory_space<vmem>>, %arg4: memref<8x1xf32, #tpu.memory_space<vmem>>, %arg5: memref<2x8x256xf32, #tpu.memory_space<vmem>>) attributes {dimension_semantics = [#tpu.dimension_semantics<parallel>], iteration_bounds = array<i64: 1>, scalar_prefetch = 0 : i64, scratch_operands = 0 : i64, tpu.core_type = #tpu.core_type<tc>, window_params = [{transform_indices = @transform_0, window_bounds = array<i64: 2, 8, 256>}, {pipeline_mode = #tpu.pipeline_mode<synchronous>, transform_indices = @transform_1, window_bounds = array<i64: 1, 8, 2>}, {pipeline_mode = #tpu.pipeline_mode<synchronous>, transform_indices = @transform_2, window_bounds = array<i64: 8, 1>}, {pipeline_mode = #tpu.pipeline_mode<synchronous>, transform_indices = @transform_3, window_bounds = array<i64: 8, 1>}, {transform_indices = @transform_4, window_bounds = array<i64: 2, 8, 256>}]} {
    %c0 = arith.constant 0 : index
    %c0_0 = arith.constant 0 : index
    %c0_1 = arith.constant 0 : index
    %0 = vector.load %arg2[%c0, %c0_0, %c0_1] : memref<1x8x2xf32, #tpu.memory_space<vmem>>, vector<1x8x2xf32>
    %cst = arith.constant dense<0.000000e+00> : vector<8x2xf32>
    %1 = vector.multi_reduction <add>, %0, %cst [0] : vector<1x8x2xf32> to vector<8x2xf32>
    %2 = vector.extract_strided_slice %1 {offsets = [0, 0], sizes = [8, 1], strides = [1, 1]} : vector<8x2xf32> to vector<8x1xf32>
    %cst_2 = arith.constant 0.001953125 : f32
    %3 = vector.broadcast %cst_2 : f32 to vector<8x1xf32>
    %4 = arith.mulf %2, %3 : vector<8x1xf32>
    %5 = vector.extract_strided_slice %1 {offsets = [0, 1], sizes = [8, 1], strides = [1, 1]} : vector<8x2xf32> to vector<8x1xf32>
    %cst_3 = arith.constant 0.001953125 : f32
    %6 = vector.broadcast %cst_3 : f32 to vector<8x1xf32>
    %7 = arith.mulf %5, %6 : vector<8x1xf32>
    %8 = arith.mulf %4, %4 : vector<8x1xf32>
    %9 = arith.subf %7, %8 : vector<8x1xf32>
    %cst_4 = arith.constant 0.000000e+00 : f32
    %10 = vector.broadcast %cst_4 : f32 to vector<8x1xf32>
    %11 = arith.maximumf %9, %10 : vector<8x1xf32>
    %c0_5 = arith.constant 0 : index
    %c0_6 = arith.constant 0 : index
    %12 = vector.load %arg3[%c0_5, %c0_6] : memref<8x1xf32, #tpu.memory_space<vmem>>, vector<8x1xf32>
    %cst_7 = arith.constant 9.99999974E-6 : f32
    %13 = vector.broadcast %cst_7 : f32 to vector<8x1xf32>
    %14 = arith.addf %11, %13 : vector<8x1xf32>
    %15 = math.rsqrt %14 : vector<8x1xf32>
    %16 = arith.mulf %12, %15 : vector<8x1xf32>
    %c0_8 = arith.constant 0 : index
    %c0_9 = arith.constant 0 : index
    %17 = vector.load %arg4[%c0_8, %c0_9] : memref<8x1xf32, #tpu.memory_space<vmem>>, vector<8x1xf32>
    %18 = arith.mulf %4, %16 : vector<8x1xf32>
    %19 = arith.subf %17, %18 : vector<8x1xf32>
    %c0_10 = arith.constant 0 : index
    %c0_11 = arith.constant 0 : index
    %c0_12 = arith.constant 0 : index
    %20 = vector.load %arg1[%c0_10, %c0_11, %c0_12] : memref<2x8x256xf32, #tpu.memory_space<vmem>>, vector<2x8x256xf32>
    %21 = vector.shape_cast %16 : vector<8x1xf32> to vector<1x8x1xf32>
    %22 = vector.broadcast %21 : vector<1x8x1xf32> to vector<2x8x256xf32>
    %23 = arith.mulf %20, %22 : vector<2x8x256xf32>
    %24 = vector.shape_cast %19 : vector<8x1xf32> to vector<1x8x1xf32>
    %25 = vector.broadcast %24 : vector<1x8x1xf32> to vector<2x8x256xf32>
    %26 = arith.addf %23, %25 : vector<2x8x256xf32>
    %cst_13 = arith.constant 0.000000e+00 : f32
    %27 = vector.broadcast %cst_13 : f32 to vector<2x8x256xf32>
    %28 = arith.maximumf %26, %27 : vector<2x8x256xf32>
    %c0_14 = arith.constant 0 : index
    %c0_15 = arith.constant 0 : index
    %c0_16 = arith.constant 0 : index
    %29 = vector.load %arg5[%c0_14, %c0_15, %c0_16] : memref<2x8x256xf32, #tpu.memory_space<vmem>>, vector<2x8x256xf32>
    tpu.vector_store %arg5[%c0_14, %c0_15, %c0_16], %28 {strides = array<i32>} : memref<2x8x256xf32, #tpu.memory_space<vmem>>, vector<2x8x256xf32>,
    return
  }
  func.func @transform_0(%arg0: i32) -> (i32, i32, i32) {
    %c0_i32 = arith.constant 0 : i32
    %c0_i32_0 = arith.constant 0 : i32
    %c0_i32_1 = arith.constant 0 : i32
    return %arg0, %c0_i32, %c0_i32_0 : i32, i32, i32
  }
  func.func @transform_1(%arg0: i32) -> (i32, i32, i32) {
    %c0_i32 = arith.constant 0 : i32
    %c0_i32_0 = arith.constant 0 : i32
    %c0_i32_1 = arith.constant 0 : i32
    %c0_i32_2 = arith.constant 0 : i32
    return %c0_i32, %c0_i32_0, %c0_i32_1 : i32, i32, i32
  }
  func.func @transform_2(%arg0: i32) -> (i32, i32) {
    %c0_i32 = arith.constant 0 : i32
    %c0_i32_0 = arith.constant 0 : i32
    %c0_i32_1 = arith.constant 0 : i32
    return %c0_i32, %c0_i32_0 : i32, i32
  }
  func.func @transform_3(%arg0: i32) -> (i32, i32) {
    %c0_i32 = arith.constant 0 : i32
    %c0_i32_0 = arith.constant 0 : i32
    %c0_i32_1 = arith.constant 0 : i32
    return %c0_i32, %c0_i32_0 : i32, i32
  }
  func.func @transform_4(%arg0: i32) -> (i32, i32, i32) {
    %c0_i32 = arith.constant 0 : i32
    %c0_i32_0 = arith.constant 0 : i32
    %c0_i32_1 = arith.constant 0 : i32
    return %arg0, %c0_i32, %c0_i32_0 : i32, i32, i32
  }
}

module attributes {stable_mosaic.version = 11 : i64} {
  func.func @_conv3x3_kernel(%arg0: i32, %arg1: memref<2x4x256xf32, #tpu.memory_space<vmem>>, %arg2: memref<8x72xf32, #tpu.memory_space<vmem>>, %arg3: memref<2x8x256xf32, #tpu.memory_space<vmem>>, %arg4: memref<1x8x2xf32, #tpu.memory_space<vmem>>, %arg5: memref<2x8x290xf32, #tpu.memory_space<vmem>>, %arg6: memref<72x512xf32, #tpu.memory_space<vmem>>) attributes {dimension_semantics = [#tpu.dimension_semantics<parallel>], iteration_bounds = array<i64: 1>, scalar_prefetch = 0 : i64, scratch_operands = 2 : i64, tpu.core_type = #tpu.core_type<tc>, window_params = [{transform_indices = @transform_0, window_bounds = array<i64: 2, 4, 256>}, {pipeline_mode = #tpu.pipeline_mode<synchronous>, transform_indices = @transform_1, window_bounds = array<i64: 8, 72>}, {transform_indices = @transform_2, window_bounds = array<i64: 2, 8, 256>}, {transform_indices = @transform_3, window_bounds = array<i64: 1, 8, 2>}]} {
    %0 = tpu.iota {dimensions = array<i32: 1>} : vector<8x256xi32>
    %c16_i32 = arith.constant 16 : i32
    %c0_i32 = arith.constant 0 : i32
    %1 = arith.cmpi eq, %c16_i32, %c0_i32 : i32
    %c1_i32 = arith.constant 1 : i32
    %2 = arith.select %1, %c1_i32, %c16_i32 : i32
    %3 = vector.broadcast %2 : i32 to vector<8x256xi32>
    %4 = arith.remsi %0, %3 : vector<8x256xi32>
    %c0_i32_0 = arith.constant 0 : i32
    %5 = vector.broadcast %c0_i32_0 : i32 to vector<8x256xi32>
    %6 = arith.cmpi ne, %4, %5 : vector<8x256xi32>
    %c0_i32_1 = arith.constant 0 : i32
    %7 = vector.broadcast %c0_i32_1 : i32 to vector<8x256xi32>
    %8 = arith.cmpi slt, %4, %7 : vector<8x256xi32>
    %c0_i32_2 = arith.constant 0 : i32
    %9 = arith.cmpi slt, %2, %c0_i32_2 : i32
    %10 = vector.broadcast %9 : i1 to vector<8x256xi1>
    %11 = vector.broadcast %10 : vector<8x256xi1> to vector<8x256xi1>
    %12 = arith.xori %8, %11 : vector<8x256xi1>
    %13 = arith.andi %12, %6 : vector<8x256xi1>
    %14 = vector.broadcast %2 : i32 to vector<8x256xi32>
    %15 = arith.addi %4, %14 : vector<8x256xi32>
    %16 = arith.select %13, %15, %4 : vector<8x256xi1>, vector<8x256xi32>
    %c1_i32_3 = arith.constant 1 : i32
    %17 = vector.broadcast %c1_i32_3 : i32 to vector<8x256xi32>
    %18 = arith.cmpi sge, %16, %17 : vector<8x256xi32>
    %c14_i32 = arith.constant 14 : i32
    %19 = vector.broadcast %c14_i32 : i32 to vector<8x256xi32>
    %20 = arith.cmpi sle, %16, %19 : vector<8x256xi32>
    %cst = arith.constant 0.000000e+00 : f32
    %21 = vector.broadcast %cst : f32 to vector<8x17xf32>
    %c0 = arith.constant 0 : index
    %c0_4 = arith.constant 0 : index
    %c0_5 = arith.constant 0 : index
    %22 = vector.load %arg1[%c0, %c0_4, %c0_5] : memref<2x4x256xf32, #tpu.memory_space<vmem>>, vector<1x4x256xf32>
    %23 = vector.shape_cast %22 : vector<1x4x256xf32> to vector<4x256xf32>
    %cst_6 = arith.constant 0.000000e+00 : f32
    %24 = vector.broadcast %cst_6 : f32 to vector<4x256xf32>
    %25 = tpu.concatenate %23, %24 in 0 : vector<4x256xf32>, vector<4x256xf32> -> vector<8x256xf32>
    %c0_7 = arith.constant 0 : index
    %c0_8 = arith.constant 0 : index
    %c0_9 = arith.constant 0 : index
    %26 = vector.load %arg5[%c0_7, %c0_8, %c0_9] : memref<2x8x290xf32, #tpu.memory_space<vmem>>, vector<1x8x17xf32>
    %27 = vector.shape_cast %26 : vector<1x8x17xf32> to vector<8x17xf32>
    %28 = vector.shape_cast %21 : vector<8x17xf32> to vector<1x8x17xf32>
    tpu.vector_store %arg5[%c0_7, %c0_8, %c0_9], %28 {strides = array<i32>} : memref<2x8x290xf32, #tpu.memory_space<vmem>>, vector<1x8x17xf32>,
    %c0_10 = arith.constant 0 : index
    %c0_11 = arith.constant 0 : index
    %c273 = arith.constant 273 : index
    %29 = vector.load %arg5[%c0_10, %c0_11, %c273] : memref<2x8x290xf32, #tpu.memory_space<vmem>>, vector<1x8x17xf32>
    %30 = vector.shape_cast %29 : vector<1x8x17xf32> to vector<8x17xf32>
    %31 = vector.shape_cast %21 : vector<8x17xf32> to vector<1x8x17xf32>
    tpu.vector_store %arg5[%c0_10, %c0_11, %c273], %31 {strides = array<i32>} : memref<2x8x290xf32, #tpu.memory_space<vmem>>, vector<1x8x17xf32>,
    %c0_12 = arith.constant 0 : index
    %c0_13 = arith.constant 0 : index
    %c17 = arith.constant 17 : index
    %32 = vector.load %arg5[%c0_12, %c0_13, %c17] : memref<2x8x290xf32, #tpu.memory_space<vmem>>, vector<1x8x256xf32>
    %33 = vector.shape_cast %32 : vector<1x8x256xf32> to vector<8x256xf32>
    %34 = vector.shape_cast %25 : vector<8x256xf32> to vector<1x8x256xf32>
    tpu.vector_store %arg5[%c0_12, %c0_13, %c17], %34 {strides = array<i32>} : memref<2x8x290xf32, #tpu.memory_space<vmem>>, vector<1x8x256xf32>,
    %c0_14 = arith.constant 0 : index
    %c0_15 = arith.constant 0 : index
    %c0_16 = arith.constant 0 : index
    %35 = vector.load %arg5[%c0_14, %c0_15, %c0_16] : memref<2x8x290xf32, #tpu.memory_space<vmem>>, vector<1x8x256xf32>
    %36 = vector.shape_cast %35 : vector<1x8x256xf32> to vector<8x256xf32>
    %cst_17 = arith.constant 0.000000e+00 : f32
    %37 = vector.broadcast %cst_17 : f32 to vector<8x256xf32>
    %38 = arith.select %18, %36, %37 : vector<8x256xi1>, vector<8x256xf32>
    %c0_18 = arith.constant 0 : index
    %c0_19 = arith.constant 0 : index
    %39 = vector.load %arg6[%c0_18, %c0_19] : memref<72x512xf32, #tpu.memory_space<vmem>>, vector<8x256xf32>
    tpu.vector_store %arg6[%c0_18, %c0_19], %38 {strides = array<i32>} : memref<72x512xf32, #tpu.memory_space<vmem>>, vector<8x256xf32>,
    %c0_20 = arith.constant 0 : index
    %c0_21 = arith.constant 0 : index
    %c1 = arith.constant 1 : index
    %40 = vector.load %arg5[%c0_20, %c0_21, %c1] : memref<2x8x290xf32, #tpu.memory_space<vmem>>, vector<1x8x256xf32>
    %41 = vector.shape_cast %40 : vector<1x8x256xf32> to vector<8x256xf32>
    %c8 = arith.constant 8 : index
    %c0_22 = arith.constant 0 : index
    %42 = vector.load %arg6[%c8, %c0_22] : memref<72x512xf32, #tpu.memory_space<vmem>>, vector<8x256xf32>
    tpu.vector_store %arg6[%c8, %c0_22], %41 {strides = array<i32>} : memref<72x512xf32, #tpu.memory_space<vmem>>, vector<8x256xf32>,
    %c0_23 = arith.constant 0 : index
    %c0_24 = arith.constant 0 : index
    %c2 = arith.constant 2 : index
    %43 = vector.load %arg5[%c0_23, %c0_24, %c2] : memref<2x8x290xf32, #tpu.memory_space<vmem>>, vector<1x8x256xf32>
    %44 = vector.shape_cast %43 : vector<1x8x256xf32> to vector<8x256xf32>
    %cst_25 = arith.constant 0.000000e+00 : f32
    %45 = vector.broadcast %cst_25 : f32 to vector<8x256xf32>
    %46 = arith.select %20, %44, %45 : vector<8x256xi1>, vector<8x256xf32>
    %c16 = arith.constant 16 : index
    %c0_26 = arith.constant 0 : index
    %47 = vector.load %arg6[%c16, %c0_26] : memref<72x512xf32, #tpu.memory_space<vmem>>, vector<8x256xf32>
    tpu.vector_store %arg6[%c16, %c0_26], %46 {strides = array<i32>} : memref<72x512xf32, #tpu.memory_space<vmem>>, vector<8x256xf32>,
    %c0_27 = arith.constant 0 : index
    %c0_28 = arith.constant 0 : index
    %c16_29 = arith.constant 16 : index
    %48 = vector.load %arg5[%c0_27, %c0_28, %c16_29] : memref<2x8x290xf32, #tpu.memory_space<vmem>>, vector<1x8x256xf32>
    %49 = vector.shape_cast %48 : vector<1x8x256xf32> to vector<8x256xf32>
    %cst_30 = arith.constant 0.000000e+00 : f32
    %50 = vector.broadcast %cst_30 : f32 to vector<8x256xf32>
    %51 = arith.select %18, %49, %50 : vector<8x256xi1>, vector<8x256xf32>
    %c24 = arith.constant 24 : index
    %c0_31 = arith.constant 0 : index
    %52 = vector.load %arg6[%c24, %c0_31] : memref<72x512xf32, #tpu.memory_space<vmem>>, vector<8x256xf32>
    tpu.vector_store %arg6[%c24, %c0_31], %51 {strides = array<i32>} : memref<72x512xf32, #tpu.memory_space<vmem>>, vector<8x256xf32>,
    %c0_32 = arith.constant 0 : index
    %c0_33 = arith.constant 0 : index
    %c17_34 = arith.constant 17 : index
    %53 = vector.load %arg5[%c0_32, %c0_33, %c17_34] : memref<2x8x290xf32, #tpu.memory_space<vmem>>, vector<1x8x256xf32>
    %54 = vector.shape_cast %53 : vector<1x8x256xf32> to vector<8x256xf32>
    %c32 = arith.constant 32 : index
    %c0_35 = arith.constant 0 : index
    %55 = vector.load %arg6[%c32, %c0_35] : memref<72x512xf32, #tpu.memory_space<vmem>>, vector<8x256xf32>
    tpu.vector_store %arg6[%c32, %c0_35], %54 {strides = array<i32>} : memref<72x512xf32, #tpu.memory_space<vmem>>, vector<8x256xf32>,
    %c0_36 = arith.constant 0 : index
    %c0_37 = arith.constant 0 : index
    %c18 = arith.constant 18 : index
    %56 = vector.load %arg5[%c0_36, %c0_37, %c18] : memref<2x8x290xf32, #tpu.memory_space<vmem>>, vector<1x8x256xf32>
    %57 = vector.shape_cast %56 : vector<1x8x256xf32> to vector<8x256xf32>
    %cst_38 = arith.constant 0.000000e+00 : f32
    %58 = vector.broadcast %cst_38 : f32 to vector<8x256xf32>
    %59 = arith.select %20, %57, %58 : vector<8x256xi1>, vector<8x256xf32>
    %c40 = arith.constant 40 : index
    %c0_39 = arith.constant 0 : index
    %60 = vector.load %arg6[%c40, %c0_39] : memref<72x512xf32, #tpu.memory_space<vmem>>, vector<8x256xf32>
    tpu.vector_store %arg6[%c40, %c0_39], %59 {strides = array<i32>} : memref<72x512xf32, #tpu.memory_space<vmem>>, vector<8x256xf32>,
    %c0_40 = arith.constant 0 : index
    %c0_41 = arith.constant 0 : index
    %c32_42 = arith.constant 32 : index
    %61 = vector.load %arg5[%c0_40, %c0_41, %c32_42] : memref<2x8x290xf32, #tpu.memory_space<vmem>>, vector<1x8x256xf32>
    %62 = vector.shape_cast %61 : vector<1x8x256xf32> to vector<8x256xf32>
    %cst_43 = arith.constant 0.000000e+00 : f32
    %63 = vector.broadcast %cst_43 : f32 to vector<8x256xf32>
    %64 = arith.select %18, %62, %63 : vector<8x256xi1>, vector<8x256xf32>
    %c48 = arith.constant 48 : index
    %c0_44 = arith.constant 0 : index
    %65 = vector.load %arg6[%c48, %c0_44] : memref<72x512xf32, #tpu.memory_space<vmem>>, vector<8x256xf32>
    tpu.vector_store %arg6[%c48, %c0_44], %64 {strides = array<i32>} : memref<72x512xf32, #tpu.memory_space<vmem>>, vector<8x256xf32>,
    %c0_45 = arith.constant 0 : index
    %c0_46 = arith.constant 0 : index
    %c33 = arith.constant 33 : index
    %66 = vector.load %arg5[%c0_45, %c0_46, %c33] : memref<2x8x290xf32, #tpu.memory_space<vmem>>, vector<1x8x256xf32>
    %67 = vector.shape_cast %66 : vector<1x8x256xf32> to vector<8x256xf32>
    %c56 = arith.constant 56 : index
    %c0_47 = arith.constant 0 : index
    %68 = vector.load %arg6[%c56, %c0_47] : memref<72x512xf32, #tpu.memory_space<vmem>>, vector<8x256xf32>
    tpu.vector_store %arg6[%c56, %c0_47], %67 {strides = array<i32>} : memref<72x512xf32, #tpu.memory_space<vmem>>, vector<8x256xf32>,
    %c0_48 = arith.constant 0 : index
    %c0_49 = arith.constant 0 : index
    %c34 = arith.constant 34 : index
    %69 = vector.load %arg5[%c0_48, %c0_49, %c34] : memref<2x8x290xf32, #tpu.memory_space<vmem>>, vector<1x8x256xf32>
    %70 = vector.shape_cast %69 : vector<1x8x256xf32> to vector<8x256xf32>
    %cst_50 = arith.constant 0.000000e+00 : f32
    %71 = vector.broadcast %cst_50 : f32 to vector<8x256xf32>
    %72 = arith.select %20, %70, %71 : vector<8x256xi1>, vector<8x256xf32>
    %c64 = arith.constant 64 : index
    %c0_51 = arith.constant 0 : index
    %73 = vector.load %arg6[%c64, %c0_51] : memref<72x512xf32, #tpu.memory_space<vmem>>, vector<8x256xf32>
    tpu.vector_store %arg6[%c64, %c0_51], %72 {strides = array<i32>} : memref<72x512xf32, #tpu.memory_space<vmem>>, vector<8x256xf32>,
    %c1_52 = arith.constant 1 : index
    %c0_53 = arith.constant 0 : index
    %c0_54 = arith.constant 0 : index
    %74 = vector.load %arg1[%c1_52, %c0_53, %c0_54] : memref<2x4x256xf32, #tpu.memory_space<vmem>>, vector<1x4x256xf32>
    %75 = vector.shape_cast %74 : vector<1x4x256xf32> to vector<4x256xf32>
    %cst_55 = arith.constant 0.000000e+00 : f32
    %76 = vector.broadcast %cst_55 : f32 to vector<4x256xf32>
    %77 = tpu.concatenate %75, %76 in 0 : vector<4x256xf32>, vector<4x256xf32> -> vector<8x256xf32>
    %c1_56 = arith.constant 1 : index
    %c0_57 = arith.constant 0 : index
    %c0_58 = arith.constant 0 : index
    %78 = vector.load %arg5[%c1_56, %c0_57, %c0_58] : memref<2x8x290xf32, #tpu.memory_space<vmem>>, vector<1x8x17xf32>
    %79 = vector.shape_cast %78 : vector<1x8x17xf32> to vector<8x17xf32>
    %80 = vector.shape_cast %21 : vector<8x17xf32> to vector<1x8x17xf32>
    tpu.vector_store %arg5[%c1_56, %c0_57, %c0_58], %80 {strides = array<i32>} : memref<2x8x290xf32, #tpu.memory_space<vmem>>, vector<1x8x17xf32>,
    %c1_59 = arith.constant 1 : index
    %c0_60 = arith.constant 0 : index
    %c273_61 = arith.constant 273 : index
    %81 = vector.load %arg5[%c1_59, %c0_60, %c273_61] : memref<2x8x290xf32, #tpu.memory_space<vmem>>, vector<1x8x17xf32>
    %82 = vector.shape_cast %81 : vector<1x8x17xf32> to vector<8x17xf32>
    %83 = vector.shape_cast %21 : vector<8x17xf32> to vector<1x8x17xf32>
    tpu.vector_store %arg5[%c1_59, %c0_60, %c273_61], %83 {strides = array<i32>} : memref<2x8x290xf32, #tpu.memory_space<vmem>>, vector<1x8x17xf32>,
    %c1_62 = arith.constant 1 : index
    %c0_63 = arith.constant 0 : index
    %c17_64 = arith.constant 17 : index
    %84 = vector.load %arg5[%c1_62, %c0_63, %c17_64] : memref<2x8x290xf32, #tpu.memory_space<vmem>>, vector<1x8x256xf32>
    %85 = vector.shape_cast %84 : vector<1x8x256xf32> to vector<8x256xf32>
    %86 = vector.shape_cast %77 : vector<8x256xf32> to vector<1x8x256xf32>
    tpu.vector_store %arg5[%c1_62, %c0_63, %c17_64], %86 {strides = array<i32>} : memref<2x8x290xf32, #tpu.memory_space<vmem>>, vector<1x8x256xf32>,
    %c1_65 = arith.constant 1 : index
    %c0_66 = arith.constant 0 : index
    %c0_67 = arith.constant 0 : index
    %87 = vector.load %arg5[%c1_65, %c0_66, %c0_67] : memref<2x8x290xf32, #tpu.memory_space<vmem>>, vector<1x8x256xf32>
    %88 = vector.shape_cast %87 : vector<1x8x256xf32> to vector<8x256xf32>
    %cst_68 = arith.constant 0.000000e+00 : f32
    %89 = vector.broadcast %cst_68 : f32 to vector<8x256xf32>
    %90 = arith.select %18, %88, %89 : vector<8x256xi1>, vector<8x256xf32>
    %c0_69 = arith.constant 0 : index
    %c256 = arith.constant 256 : index
    %91 = vector.load %arg6[%c0_69, %c256] : memref<72x512xf32, #tpu.memory_space<vmem>>, vector<8x256xf32>
    tpu.vector_store %arg6[%c0_69, %c256], %90 {strides = array<i32>} : memref<72x512xf32, #tpu.memory_space<vmem>>, vector<8x256xf32>,
    %c1_70 = arith.constant 1 : index
    %c0_71 = arith.constant 0 : index
    %c1_72 = arith.constant 1 : index
    %92 = vector.load %arg5[%c1_70, %c0_71, %c1_72] : memref<2x8x290xf32, #tpu.memory_space<vmem>>, vector<1x8x256xf32>
    %93 = vector.shape_cast %92 : vector<1x8x256xf32> to vector<8x256xf32>
    %c8_73 = arith.constant 8 : index
    %c256_74 = arith.constant 256 : index
    %94 = vector.load %arg6[%c8_73, %c256_74] : memref<72x512xf32, #tpu.memory_space<vmem>>, vector<8x256xf32>
    tpu.vector_store %arg6[%c8_73, %c256_74], %93 {strides = array<i32>} : memref<72x512xf32, #tpu.memory_space<vmem>>, vector<8x256xf32>,
    %c1_75 = arith.constant 1 : index
    %c0_76 = arith.constant 0 : index
    %c2_77 = arith.constant 2 : index
    %95 = vector.load %arg5[%c1_75, %c0_76, %c2_77] : memref<2x8x290xf32, #tpu.memory_space<vmem>>, vector<1x8x256xf32>
    %96 = vector.shape_cast %95 : vector<1x8x256xf32> to vector<8x256xf32>
    %cst_78 = arith.constant 0.000000e+00 : f32
    %97 = vector.broadcast %cst_78 : f32 to vector<8x256xf32>
    %98 = arith.select %20, %96, %97 : vector<8x256xi1>, vector<8x256xf32>
    %c16_79 = arith.constant 16 : index
    %c256_80 = arith.constant 256 : index
    %99 = vector.load %arg6[%c16_79, %c256_80] : memref<72x512xf32, #tpu.memory_space<vmem>>, vector<8x256xf32>
    tpu.vector_store %arg6[%c16_79, %c256_80], %98 {strides = array<i32>} : memref<72x512xf32, #tpu.memory_space<vmem>>, vector<8x256xf32>,
    %c1_81 = arith.constant 1 : index
    %c0_82 = arith.constant 0 : index
    %c16_83 = arith.constant 16 : index
    %100 = vector.load %arg5[%c1_81, %c0_82, %c16_83] : memref<2x8x290xf32, #tpu.memory_space<vmem>>, vector<1x8x256xf32>
    %101 = vector.shape_cast %100 : vector<1x8x256xf32> to vector<8x256xf32>
    %cst_84 = arith.constant 0.000000e+00 : f32
    %102 = vector.broadcast %cst_84 : f32 to vector<8x256xf32>
    %103 = arith.select %18, %101, %102 : vector<8x256xi1>, vector<8x256xf32>
    %c24_85 = arith.constant 24 : index
    %c256_86 = arith.constant 256 : index
    %104 = vector.load %arg6[%c24_85, %c256_86] : memref<72x512xf32, #tpu.memory_space<vmem>>, vector<8x256xf32>
    tpu.vector_store %arg6[%c24_85, %c256_86], %103 {strides = array<i32>} : memref<72x512xf32, #tpu.memory_space<vmem>>, vector<8x256xf32>,
    %c1_87 = arith.constant 1 : index
    %c0_88 = arith.constant 0 : index
    %c17_89 = arith.constant 17 : index
    %105 = vector.load %arg5[%c1_87, %c0_88, %c17_89] : memref<2x8x290xf32, #tpu.memory_space<vmem>>, vector<1x8x256xf32>
    %106 = vector.shape_cast %105 : vector<1x8x256xf32> to vector<8x256xf32>
    %c32_90 = arith.constant 32 : index
    %c256_91 = arith.constant 256 : index
    %107 = vector.load %arg6[%c32_90, %c256_91] : memref<72x512xf32, #tpu.memory_space<vmem>>, vector<8x256xf32>
    tpu.vector_store %arg6[%c32_90, %c256_91], %106 {strides = array<i32>} : memref<72x512xf32, #tpu.memory_space<vmem>>, vector<8x256xf32>,
    %c1_92 = arith.constant 1 : index
    %c0_93 = arith.constant 0 : index
    %c18_94 = arith.constant 18 : index
    %108 = vector.load %arg5[%c1_92, %c0_93, %c18_94] : memref<2x8x290xf32, #tpu.memory_space<vmem>>, vector<1x8x256xf32>
    %109 = vector.shape_cast %108 : vector<1x8x256xf32> to vector<8x256xf32>
    %cst_95 = arith.constant 0.000000e+00 : f32
    %110 = vector.broadcast %cst_95 : f32 to vector<8x256xf32>
    %111 = arith.select %20, %109, %110 : vector<8x256xi1>, vector<8x256xf32>
    %c40_96 = arith.constant 40 : index
    %c256_97 = arith.constant 256 : index
    %112 = vector.load %arg6[%c40_96, %c256_97] : memref<72x512xf32, #tpu.memory_space<vmem>>, vector<8x256xf32>
    tpu.vector_store %arg6[%c40_96, %c256_97], %111 {strides = array<i32>} : memref<72x512xf32, #tpu.memory_space<vmem>>, vector<8x256xf32>,
    %c1_98 = arith.constant 1 : index
    %c0_99 = arith.constant 0 : index
    %c32_100 = arith.constant 32 : index
    %113 = vector.load %arg5[%c1_98, %c0_99, %c32_100] : memref<2x8x290xf32, #tpu.memory_space<vmem>>, vector<1x8x256xf32>
    %114 = vector.shape_cast %113 : vector<1x8x256xf32> to vector<8x256xf32>
    %cst_101 = arith.constant 0.000000e+00 : f32
    %115 = vector.broadcast %cst_101 : f32 to vector<8x256xf32>
    %116 = arith.select %18, %114, %115 : vector<8x256xi1>, vector<8x256xf32>
    %c48_102 = arith.constant 48 : index
    %c256_103 = arith.constant 256 : index
    %117 = vector.load %arg6[%c48_102, %c256_103] : memref<72x512xf32, #tpu.memory_space<vmem>>, vector<8x256xf32>
    tpu.vector_store %arg6[%c48_102, %c256_103], %116 {strides = array<i32>} : memref<72x512xf32, #tpu.memory_space<vmem>>, vector<8x256xf32>,
    %c1_104 = arith.constant 1 : index
    %c0_105 = arith.constant 0 : index
    %c33_106 = arith.constant 33 : index
    %118 = vector.load %arg5[%c1_104, %c0_105, %c33_106] : memref<2x8x290xf32, #tpu.memory_space<vmem>>, vector<1x8x256xf32>
    %119 = vector.shape_cast %118 : vector<1x8x256xf32> to vector<8x256xf32>
    %c56_107 = arith.constant 56 : index
    %c256_108 = arith.constant 256 : index
    %120 = vector.load %arg6[%c56_107, %c256_108] : memref<72x512xf32, #tpu.memory_space<vmem>>, vector<8x256xf32>
    tpu.vector_store %arg6[%c56_107, %c256_108], %119 {strides = array<i32>} : memref<72x512xf32, #tpu.memory_space<vmem>>, vector<8x256xf32>,
    %c1_109 = arith.constant 1 : index
    %c0_110 = arith.constant 0 : index
    %c34_111 = arith.constant 34 : index
    %121 = vector.load %arg5[%c1_109, %c0_110, %c34_111] : memref<2x8x290xf32, #tpu.memory_space<vmem>>, vector<1x8x256xf32>
    %122 = vector.shape_cast %121 : vector<1x8x256xf32> to vector<8x256xf32>
    %cst_112 = arith.constant 0.000000e+00 : f32
    %123 = vector.broadcast %cst_112 : f32 to vector<8x256xf32>
    %124 = arith.select %20, %122, %123 : vector<8x256xi1>, vector<8x256xf32>
    %c64_113 = arith.constant 64 : index
    %c256_114 = arith.constant 256 : index
    %125 = vector.load %arg6[%c64_113, %c256_114] : memref<72x512xf32, #tpu.memory_space<vmem>>, vector<8x256xf32>
    tpu.vector_store %arg6[%c64_113, %c256_114], %124 {strides = array<i32>} : memref<72x512xf32, #tpu.memory_space<vmem>>, vector<8x256xf32>,
    %c0_115 = arith.constant 0 : index
    %c0_116 = arith.constant 0 : index
    %126 = vector.load %arg2[%c0_115, %c0_116] : memref<8x72xf32, #tpu.memory_space<vmem>>, vector<8x72xf32>
    %c0_117 = arith.constant 0 : index
    %c0_118 = arith.constant 0 : index
    %127 = vector.load %arg6[%c0_117, %c0_118] : memref<72x512xf32, #tpu.memory_space<vmem>>, vector<72x512xf32>
    %cst_119 = arith.constant dense<0.000000e+00> : vector<8x512xf32>
    %128 = tpu.matmul %126, %127, %cst_119 {dimension_numbers = #tpu.dot_dimension_numbers<[1], [0], [0], [1], [0, 0, 1, 1], [], []>} : vector<8x72xf32>, vector<72x512xf32>, vector<8x512xf32> -> vector<8x512xf32>
    %129 = vector.extract_strided_slice %128 {offsets = [0, 0], sizes = [8, 256], strides = [1, 1]} : vector<8x512xf32> to vector<8x256xf32>
    %c0_120 = arith.constant 0 : index
    %c0_121 = arith.constant 0 : index
    %c0_122 = arith.constant 0 : index
    %130 = vector.load %arg3[%c0_120, %c0_121, %c0_122] : memref<2x8x256xf32, #tpu.memory_space<vmem>>, vector<1x8x256xf32>
    %131 = vector.shape_cast %130 : vector<1x8x256xf32> to vector<8x256xf32>
    %132 = vector.shape_cast %129 : vector<8x256xf32> to vector<1x8x256xf32>
    tpu.vector_store %arg3[%c0_120, %c0_121, %c0_122], %132 {strides = array<i32>} : memref<2x8x256xf32, #tpu.memory_space<vmem>>, vector<1x8x256xf32>,
    %133 = vector.extract_strided_slice %128 {offsets = [0, 256], sizes = [8, 256], strides = [1, 1]} : vector<8x512xf32> to vector<8x256xf32>
    %c1_123 = arith.constant 1 : index
    %c0_124 = arith.constant 0 : index
    %c0_125 = arith.constant 0 : index
    %134 = vector.load %arg3[%c1_123, %c0_124, %c0_125] : memref<2x8x256xf32, #tpu.memory_space<vmem>>, vector<1x8x256xf32>
    %135 = vector.shape_cast %134 : vector<1x8x256xf32> to vector<8x256xf32>
    %136 = vector.shape_cast %133 : vector<8x256xf32> to vector<1x8x256xf32>
    tpu.vector_store %arg3[%c1_123, %c0_124, %c0_125], %136 {strides = array<i32>} : memref<2x8x256xf32, #tpu.memory_space<vmem>>, vector<1x8x256xf32>,
    %cst_126 = arith.constant dense<0.000000e+00> : vector<8xf32>
    %137 = vector.multi_reduction <add>, %128, %cst_126 [1] : vector<8x512xf32> to vector<8xf32>
    %138 = vector.shape_cast %137 : vector<8xf32> to vector<8x1xf32>
    %c0_127 = arith.constant 0 : index
    %c0_128 = arith.constant 0 : index
    %c0_129 = arith.constant 0 : index
    %139 = vector.load %arg4[%c0_127, %c0_128, %c0_129] : memref<1x8x2xf32, #tpu.memory_space<vmem>>, vector<1x8x1xf32>
    %140 = vector.shape_cast %139 : vector<1x8x1xf32> to vector<8x1xf32>
    %141 = vector.shape_cast %138 : vector<8x1xf32> to vector<1x8x1xf32>
    tpu.vector_store %arg4[%c0_127, %c0_128, %c0_129], %141 {strides = array<i32>} : memref<1x8x2xf32, #tpu.memory_space<vmem>>, vector<1x8x1xf32>,
    %142 = arith.mulf %128, %128 : vector<8x512xf32>
    %cst_130 = arith.constant dense<0.000000e+00> : vector<8xf32>
    %143 = vector.multi_reduction <add>, %142, %cst_130 [1] : vector<8x512xf32> to vector<8xf32>
    %144 = vector.shape_cast %143 : vector<8xf32> to vector<8x1xf32>
    %c0_131 = arith.constant 0 : index
    %c0_132 = arith.constant 0 : index
    %c1_133 = arith.constant 1 : index
    %145 = vector.load %arg4[%c0_131, %c0_132, %c1_133] : memref<1x8x2xf32, #tpu.memory_space<vmem>>, vector<1x8x1xf32>
    %146 = vector.shape_cast %145 : vector<1x8x1xf32> to vector<8x1xf32>
    %147 = vector.shape_cast %144 : vector<8x1xf32> to vector<1x8x1xf32>
    tpu.vector_store %arg4[%c0_131, %c0_132, %c1_133], %147 {strides = array<i32>} : memref<1x8x2xf32, #tpu.memory_space<vmem>>, vector<1x8x1xf32>,
    return
  }
  func.func @transform_0(%arg0: i32) -> (i32, i32, i32) {
    %c0_i32 = arith.constant 0 : i32
    %c0_i32_0 = arith.constant 0 : i32
    %c0_i32_1 = arith.constant 0 : i32
    return %arg0, %c0_i32, %c0_i32_0 : i32, i32, i32
  }
  func.func @transform_1(%arg0: i32) -> (i32, i32) {
    %c0_i32 = arith.constant 0 : i32
    %c0_i32_0 = arith.constant 0 : i32
    %c0_i32_1 = arith.constant 0 : i32
    return %c0_i32, %c0_i32_0 : i32, i32
  }
  func.func @transform_2(%arg0: i32) -> (i32, i32, i32) {
    %c0_i32 = arith.constant 0 : i32
    %c0_i32_0 = arith.constant 0 : i32
    %c0_i32_1 = arith.constant 0 : i32
    return %arg0, %c0_i32, %c0_i32_0 : i32, i32, i32
  }
  func.func @transform_3(%arg0: i32) -> (i32, i32, i32) {
    %c0_i32 = arith.constant 0 : i32
    %c0_i32_0 = arith.constant 0 : i32
    %c0_i32_1 = arith.constant 0 : i32
    return %arg0, %c0_i32, %c0_i32_0 : i32, i32, i32
  }
}

module attributes {stable_mosaic.version = 11 : i64} {
  func.func @_conv3x3_kernel(%arg0: i32, %arg1: memref<2x8x256xf32, #tpu.memory_space<vmem>>, %arg2: memref<1x8x2xf32, #tpu.memory_space<vmem>>, %arg3: memref<8x1xf32, #tpu.memory_space<vmem>>, %arg4: memref<8x1xf32, #tpu.memory_space<vmem>>, %arg5: memref<8x72xf32, #tpu.memory_space<vmem>>, %arg6: memref<2x8x256xf32, #tpu.memory_space<vmem>>, %arg7: memref<1x8x2xf32, #tpu.memory_space<vmem>>, %arg8: memref<2x8x290xf32, #tpu.memory_space<vmem>>, %arg9: memref<72x512xf32, #tpu.memory_space<vmem>>) attributes {dimension_semantics = [#tpu.dimension_semantics<parallel>], iteration_bounds = array<i64: 1>, scalar_prefetch = 0 : i64, scratch_operands = 2 : i64, tpu.core_type = #tpu.core_type<tc>, window_params = [{transform_indices = @transform_0, window_bounds = array<i64: 2, 8, 256>}, {pipeline_mode = #tpu.pipeline_mode<synchronous>, transform_indices = @transform_1, window_bounds = array<i64: 1, 8, 2>}, {pipeline_mode = #tpu.pipeline_mode<synchronous>, transform_indices = @transform_2, window_bounds = array<i64: 8, 1>}, {pipeline_mode = #tpu.pipeline_mode<synchronous>, transform_indices = @transform_3, window_bounds = array<i64: 8, 1>}, {pipeline_mode = #tpu.pipeline_mode<synchronous>, transform_indices = @transform_4, window_bounds = array<i64: 8, 72>}, {transform_indices = @transform_5, window_bounds = array<i64: 2, 8, 256>}, {transform_indices = @transform_6, window_bounds = array<i64: 1, 8, 2>}]} {
    %c0 = arith.constant 0 : index
    %c0_0 = arith.constant 0 : index
    %c0_1 = arith.constant 0 : index
    %0 = vector.load %arg2[%c0, %c0_0, %c0_1] : memref<1x8x2xf32, #tpu.memory_space<vmem>>, vector<1x8x2xf32>
    %cst = arith.constant dense<0.000000e+00> : vector<8x2xf32>
    %1 = vector.multi_reduction <add>, %0, %cst [0] : vector<1x8x2xf32> to vector<8x2xf32>
    %2 = vector.extract_strided_slice %1 {offsets = [0, 0], sizes = [8, 1], strides = [1, 1]} : vector<8x2xf32> to vector<8x1xf32>
    %cst_2 = arith.constant 0.001953125 : f32
    %3 = vector.broadcast %cst_2 : f32 to vector<8x1xf32>
    %4 = arith.mulf %2, %3 : vector<8x1xf32>
    %5 = vector.extract_strided_slice %1 {offsets = [0, 1], sizes = [8, 1], strides = [1, 1]} : vector<8x2xf32> to vector<8x1xf32>
    %cst_3 = arith.constant 0.001953125 : f32
    %6 = vector.broadcast %cst_3 : f32 to vector<8x1xf32>
    %7 = arith.mulf %5, %6 : vector<8x1xf32>
    %8 = arith.mulf %4, %4 : vector<8x1xf32>
    %9 = arith.subf %7, %8 : vector<8x1xf32>
    %cst_4 = arith.constant 0.000000e+00 : f32
    %10 = vector.broadcast %cst_4 : f32 to vector<8x1xf32>
    %11 = arith.maximumf %9, %10 : vector<8x1xf32>
    %c0_5 = arith.constant 0 : index
    %c0_6 = arith.constant 0 : index
    %12 = vector.load %arg3[%c0_5, %c0_6] : memref<8x1xf32, #tpu.memory_space<vmem>>, vector<8x1xf32>
    %cst_7 = arith.constant 9.99999974E-6 : f32
    %13 = vector.broadcast %cst_7 : f32 to vector<8x1xf32>
    %14 = arith.addf %11, %13 : vector<8x1xf32>
    %15 = math.rsqrt %14 : vector<8x1xf32>
    %16 = arith.mulf %12, %15 : vector<8x1xf32>
    %c0_8 = arith.constant 0 : index
    %c0_9 = arith.constant 0 : index
    %17 = vector.load %arg4[%c0_8, %c0_9] : memref<8x1xf32, #tpu.memory_space<vmem>>, vector<8x1xf32>
    %18 = arith.mulf %4, %16 : vector<8x1xf32>
    %19 = arith.subf %17, %18 : vector<8x1xf32>
    %20 = tpu.iota {dimensions = array<i32: 1>} : vector<8x256xi32>
    %c16_i32 = arith.constant 16 : i32
    %c0_i32 = arith.constant 0 : i32
    %21 = arith.cmpi eq, %c16_i32, %c0_i32 : i32
    %c1_i32 = arith.constant 1 : i32
    %22 = arith.select %21, %c1_i32, %c16_i32 : i32
    %23 = vector.broadcast %22 : i32 to vector<8x256xi32>
    %24 = arith.remsi %20, %23 : vector<8x256xi32>
    %c0_i32_10 = arith.constant 0 : i32
    %25 = vector.broadcast %c0_i32_10 : i32 to vector<8x256xi32>
    %26 = arith.cmpi ne, %24, %25 : vector<8x256xi32>
    %c0_i32_11 = arith.constant 0 : i32
    %27 = vector.broadcast %c0_i32_11 : i32 to vector<8x256xi32>
    %28 = arith.cmpi slt, %24, %27 : vector<8x256xi32>
    %c0_i32_12 = arith.constant 0 : i32
    %29 = arith.cmpi slt, %22, %c0_i32_12 : i32
    %30 = vector.broadcast %29 : i1 to vector<8x256xi1>
    %31 = vector.broadcast %30 : vector<8x256xi1> to vector<8x256xi1>
    %32 = arith.xori %28, %31 : vector<8x256xi1>
    %33 = arith.andi %32, %26 : vector<8x256xi1>
    %34 = vector.broadcast %22 : i32 to vector<8x256xi32>
    %35 = arith.addi %24, %34 : vector<8x256xi32>
    %36 = arith.select %33, %35, %24 : vector<8x256xi1>, vector<8x256xi32>
    %c1_i32_13 = arith.constant 1 : i32
    %37 = vector.broadcast %c1_i32_13 : i32 to vector<8x256xi32>
    %38 = arith.cmpi sge, %36, %37 : vector<8x256xi32>
    %c14_i32 = arith.constant 14 : i32
    %39 = vector.broadcast %c14_i32 : i32 to vector<8x256xi32>
    %40 = arith.cmpi sle, %36, %39 : vector<8x256xi32>
    %cst_14 = arith.constant 0.000000e+00 : f32
    %41 = vector.broadcast %cst_14 : f32 to vector<8x17xf32>
    %c0_15 = arith.constant 0 : index
    %c0_16 = arith.constant 0 : index
    %c0_17 = arith.constant 0 : index
    %42 = vector.load %arg1[%c0_15, %c0_16, %c0_17] : memref<2x8x256xf32, #tpu.memory_space<vmem>>, vector<1x8x256xf32>
    %43 = vector.shape_cast %42 : vector<1x8x256xf32> to vector<8x256xf32>
    %44 = vector.broadcast %16 : vector<8x1xf32> to vector<8x256xf32>
    %45 = arith.mulf %43, %44 : vector<8x256xf32>
    %46 = vector.broadcast %19 : vector<8x1xf32> to vector<8x256xf32>
    %47 = arith.addf %45, %46 : vector<8x256xf32>
    %cst_18 = arith.constant 0.000000e+00 : f32
    %48 = vector.broadcast %cst_18 : f32 to vector<8x256xf32>
    %49 = arith.maximumf %47, %48 : vector<8x256xf32>
    %c0_19 = arith.constant 0 : index
    %c0_20 = arith.constant 0 : index
    %c0_21 = arith.constant 0 : index
    %50 = vector.load %arg8[%c0_19, %c0_20, %c0_21] : memref<2x8x290xf32, #tpu.memory_space<vmem>>, vector<1x8x17xf32>
    %51 = vector.shape_cast %50 : vector<1x8x17xf32> to vector<8x17xf32>
    %52 = vector.shape_cast %41 : vector<8x17xf32> to vector<1x8x17xf32>
    tpu.vector_store %arg8[%c0_19, %c0_20, %c0_21], %52 {strides = array<i32>} : memref<2x8x290xf32, #tpu.memory_space<vmem>>, vector<1x8x17xf32>,
    %c0_22 = arith.constant 0 : index
    %c0_23 = arith.constant 0 : index
    %c273 = arith.constant 273 : index
    %53 = vector.load %arg8[%c0_22, %c0_23, %c273] : memref<2x8x290xf32, #tpu.memory_space<vmem>>, vector<1x8x17xf32>
    %54 = vector.shape_cast %53 : vector<1x8x17xf32> to vector<8x17xf32>
    %55 = vector.shape_cast %41 : vector<8x17xf32> to vector<1x8x17xf32>
    tpu.vector_store %arg8[%c0_22, %c0_23, %c273], %55 {strides = array<i32>} : memref<2x8x290xf32, #tpu.memory_space<vmem>>, vector<1x8x17xf32>,
    %c0_24 = arith.constant 0 : index
    %c0_25 = arith.constant 0 : index
    %c17 = arith.constant 17 : index
    %56 = vector.load %arg8[%c0_24, %c0_25, %c17] : memref<2x8x290xf32, #tpu.memory_space<vmem>>, vector<1x8x256xf32>
    %57 = vector.shape_cast %56 : vector<1x8x256xf32> to vector<8x256xf32>
    %58 = vector.shape_cast %49 : vector<8x256xf32> to vector<1x8x256xf32>
    tpu.vector_store %arg8[%c0_24, %c0_25, %c17], %58 {strides = array<i32>} : memref<2x8x290xf32, #tpu.memory_space<vmem>>, vector<1x8x256xf32>,
    %c0_26 = arith.constant 0 : index
    %c0_27 = arith.constant 0 : index
    %c0_28 = arith.constant 0 : index
    %59 = vector.load %arg8[%c0_26, %c0_27, %c0_28] : memref<2x8x290xf32, #tpu.memory_space<vmem>>, vector<1x8x256xf32>
    %60 = vector.shape_cast %59 : vector<1x8x256xf32> to vector<8x256xf32>
    %cst_29 = arith.constant 0.000000e+00 : f32
    %61 = vector.broadcast %cst_29 : f32 to vector<8x256xf32>
    %62 = arith.select %38, %60, %61 : vector<8x256xi1>, vector<8x256xf32>
    %c0_30 = arith.constant 0 : index
    %c0_31 = arith.constant 0 : index
    %63 = vector.load %arg9[%c0_30, %c0_31] : memref<72x512xf32, #tpu.memory_space<vmem>>, vector<8x256xf32>
    tpu.vector_store %arg9[%c0_30, %c0_31], %62 {strides = array<i32>} : memref<72x512xf32, #tpu.memory_space<vmem>>, vector<8x256xf32>,
    %c0_32 = arith.constant 0 : index
    %c0_33 = arith.constant 0 : index
    %c1 = arith.constant 1 : index
    %64 = vector.load %arg8[%c0_32, %c0_33, %c1] : memref<2x8x290xf32, #tpu.memory_space<vmem>>, vector<1x8x256xf32>
    %65 = vector.shape_cast %64 : vector<1x8x256xf32> to vector<8x256xf32>
    %c8 = arith.constant 8 : index
    %c0_34 = arith.constant 0 : index
    %66 = vector.load %arg9[%c8, %c0_34] : memref<72x512xf32, #tpu.memory_space<vmem>>, vector<8x256xf32>
    tpu.vector_store %arg9[%c8, %c0_34], %65 {strides = array<i32>} : memref<72x512xf32, #tpu.memory_space<vmem>>, vector<8x256xf32>,
    %c0_35 = arith.constant 0 : index
    %c0_36 = arith.constant 0 : index
    %c2 = arith.constant 2 : index
    %67 = vector.load %arg8[%c0_35, %c0_36, %c2] : memref<2x8x290xf32, #tpu.memory_space<vmem>>, vector<1x8x256xf32>
    %68 = vector.shape_cast %67 : vector<1x8x256xf32> to vector<8x256xf32>
    %cst_37 = arith.constant 0.000000e+00 : f32
    %69 = vector.broadcast %cst_37 : f32 to vector<8x256xf32>
    %70 = arith.select %40, %68, %69 : vector<8x256xi1>, vector<8x256xf32>
    %c16 = arith.constant 16 : index
    %c0_38 = arith.constant 0 : index
    %71 = vector.load %arg9[%c16, %c0_38] : memref<72x512xf32, #tpu.memory_space<vmem>>, vector<8x256xf32>
    tpu.vector_store %arg9[%c16, %c0_38], %70 {strides = array<i32>} : memref<72x512xf32, #tpu.memory_space<vmem>>, vector<8x256xf32>,
    %c0_39 = arith.constant 0 : index
    %c0_40 = arith.constant 0 : index
    %c16_41 = arith.constant 16 : index
    %72 = vector.load %arg8[%c0_39, %c0_40, %c16_41] : memref<2x8x290xf32, #tpu.memory_space<vmem>>, vector<1x8x256xf32>
    %73 = vector.shape_cast %72 : vector<1x8x256xf32> to vector<8x256xf32>
    %cst_42 = arith.constant 0.000000e+00 : f32
    %74 = vector.broadcast %cst_42 : f32 to vector<8x256xf32>
    %75 = arith.select %38, %73, %74 : vector<8x256xi1>, vector<8x256xf32>
    %c24 = arith.constant 24 : index
    %c0_43 = arith.constant 0 : index
    %76 = vector.load %arg9[%c24, %c0_43] : memref<72x512xf32, #tpu.memory_space<vmem>>, vector<8x256xf32>
    tpu.vector_store %arg9[%c24, %c0_43], %75 {strides = array<i32>} : memref<72x512xf32, #tpu.memory_space<vmem>>, vector<8x256xf32>,
    %c0_44 = arith.constant 0 : index
    %c0_45 = arith.constant 0 : index
    %c17_46 = arith.constant 17 : index
    %77 = vector.load %arg8[%c0_44, %c0_45, %c17_46] : memref<2x8x290xf32, #tpu.memory_space<vmem>>, vector<1x8x256xf32>
    %78 = vector.shape_cast %77 : vector<1x8x256xf32> to vector<8x256xf32>
    %c32 = arith.constant 32 : index
    %c0_47 = arith.constant 0 : index
    %79 = vector.load %arg9[%c32, %c0_47] : memref<72x512xf32, #tpu.memory_space<vmem>>, vector<8x256xf32>
    tpu.vector_store %arg9[%c32, %c0_47], %78 {strides = array<i32>} : memref<72x512xf32, #tpu.memory_space<vmem>>, vector<8x256xf32>,
    %c0_48 = arith.constant 0 : index
    %c0_49 = arith.constant 0 : index
    %c18 = arith.constant 18 : index
    %80 = vector.load %arg8[%c0_48, %c0_49, %c18] : memref<2x8x290xf32, #tpu.memory_space<vmem>>, vector<1x8x256xf32>
    %81 = vector.shape_cast %80 : vector<1x8x256xf32> to vector<8x256xf32>
    %cst_50 = arith.constant 0.000000e+00 : f32
    %82 = vector.broadcast %cst_50 : f32 to vector<8x256xf32>
    %83 = arith.select %40, %81, %82 : vector<8x256xi1>, vector<8x256xf32>
    %c40 = arith.constant 40 : index
    %c0_51 = arith.constant 0 : index
    %84 = vector.load %arg9[%c40, %c0_51] : memref<72x512xf32, #tpu.memory_space<vmem>>, vector<8x256xf32>
    tpu.vector_store %arg9[%c40, %c0_51], %83 {strides = array<i32>} : memref<72x512xf32, #tpu.memory_space<vmem>>, vector<8x256xf32>,
    %c0_52 = arith.constant 0 : index
    %c0_53 = arith.constant 0 : index
    %c32_54 = arith.constant 32 : index
    %85 = vector.load %arg8[%c0_52, %c0_53, %c32_54] : memref<2x8x290xf32, #tpu.memory_space<vmem>>, vector<1x8x256xf32>
    %86 = vector.shape_cast %85 : vector<1x8x256xf32> to vector<8x256xf32>
    %cst_55 = arith.constant 0.000000e+00 : f32
    %87 = vector.broadcast %cst_55 : f32 to vector<8x256xf32>
    %88 = arith.select %38, %86, %87 : vector<8x256xi1>, vector<8x256xf32>
    %c48 = arith.constant 48 : index
    %c0_56 = arith.constant 0 : index
    %89 = vector.load %arg9[%c48, %c0_56] : memref<72x512xf32, #tpu.memory_space<vmem>>, vector<8x256xf32>
    tpu.vector_store %arg9[%c48, %c0_56], %88 {strides = array<i32>} : memref<72x512xf32, #tpu.memory_space<vmem>>, vector<8x256xf32>,
    %c0_57 = arith.constant 0 : index
    %c0_58 = arith.constant 0 : index
    %c33 = arith.constant 33 : index
    %90 = vector.load %arg8[%c0_57, %c0_58, %c33] : memref<2x8x290xf32, #tpu.memory_space<vmem>>, vector<1x8x256xf32>
    %91 = vector.shape_cast %90 : vector<1x8x256xf32> to vector<8x256xf32>
    %c56 = arith.constant 56 : index
    %c0_59 = arith.constant 0 : index
    %92 = vector.load %arg9[%c56, %c0_59] : memref<72x512xf32, #tpu.memory_space<vmem>>, vector<8x256xf32>
    tpu.vector_store %arg9[%c56, %c0_59], %91 {strides = array<i32>} : memref<72x512xf32, #tpu.memory_space<vmem>>, vector<8x256xf32>,
    %c0_60 = arith.constant 0 : index
    %c0_61 = arith.constant 0 : index
    %c34 = arith.constant 34 : index
    %93 = vector.load %arg8[%c0_60, %c0_61, %c34] : memref<2x8x290xf32, #tpu.memory_space<vmem>>, vector<1x8x256xf32>
    %94 = vector.shape_cast %93 : vector<1x8x256xf32> to vector<8x256xf32>
    %cst_62 = arith.constant 0.000000e+00 : f32
    %95 = vector.broadcast %cst_62 : f32 to vector<8x256xf32>
    %96 = arith.select %40, %94, %95 : vector<8x256xi1>, vector<8x256xf32>
    %c64 = arith.constant 64 : index
    %c0_63 = arith.constant 0 : index
    %97 = vector.load %arg9[%c64, %c0_63] : memref<72x512xf32, #tpu.memory_space<vmem>>, vector<8x256xf32>
    tpu.vector_store %arg9[%c64, %c0_63], %96 {strides = array<i32>} : memref<72x512xf32, #tpu.memory_space<vmem>>, vector<8x256xf32>,
    %c1_64 = arith.constant 1 : index
    %c0_65 = arith.constant 0 : index
    %c0_66 = arith.constant 0 : index
    %98 = vector.load %arg1[%c1_64, %c0_65, %c0_66] : memref<2x8x256xf32, #tpu.memory_space<vmem>>, vector<1x8x256xf32>
    %99 = vector.shape_cast %98 : vector<1x8x256xf32> to vector<8x256xf32>
    %100 = vector.broadcast %16 : vector<8x1xf32> to vector<8x256xf32>
    %101 = arith.mulf %99, %100 : vector<8x256xf32>
    %102 = vector.broadcast %19 : vector<8x1xf32> to vector<8x256xf32>
    %103 = arith.addf %101, %102 : vector<8x256xf32>
    %cst_67 = arith.constant 0.000000e+00 : f32
    %104 = vector.broadcast %cst_67 : f32 to vector<8x256xf32>
    %105 = arith.maximumf %103, %104 : vector<8x256xf32>
    %c1_68 = arith.constant 1 : index
    %c0_69 = arith.constant 0 : index
    %c0_70 = arith.constant 0 : index
    %106 = vector.load %arg8[%c1_68, %c0_69, %c0_70] : memref<2x8x290xf32, #tpu.memory_space<vmem>>, vector<1x8x17xf32>
    %107 = vector.shape_cast %106 : vector<1x8x17xf32> to vector<8x17xf32>
    %108 = vector.shape_cast %41 : vector<8x17xf32> to vector<1x8x17xf32>
    tpu.vector_store %arg8[%c1_68, %c0_69, %c0_70], %108 {strides = array<i32>} : memref<2x8x290xf32, #tpu.memory_space<vmem>>, vector<1x8x17xf32>,
    %c1_71 = arith.constant 1 : index
    %c0_72 = arith.constant 0 : index
    %c273_73 = arith.constant 273 : index
    %109 = vector.load %arg8[%c1_71, %c0_72, %c273_73] : memref<2x8x290xf32, #tpu.memory_space<vmem>>, vector<1x8x17xf32>
    %110 = vector.shape_cast %109 : vector<1x8x17xf32> to vector<8x17xf32>
    %111 = vector.shape_cast %41 : vector<8x17xf32> to vector<1x8x17xf32>
    tpu.vector_store %arg8[%c1_71, %c0_72, %c273_73], %111 {strides = array<i32>} : memref<2x8x290xf32, #tpu.memory_space<vmem>>, vector<1x8x17xf32>,
    %c1_74 = arith.constant 1 : index
    %c0_75 = arith.constant 0 : index
    %c17_76 = arith.constant 17 : index
    %112 = vector.load %arg8[%c1_74, %c0_75, %c17_76] : memref<2x8x290xf32, #tpu.memory_space<vmem>>, vector<1x8x256xf32>
    %113 = vector.shape_cast %112 : vector<1x8x256xf32> to vector<8x256xf32>
    %114 = vector.shape_cast %105 : vector<8x256xf32> to vector<1x8x256xf32>
    tpu.vector_store %arg8[%c1_74, %c0_75, %c17_76], %114 {strides = array<i32>} : memref<2x8x290xf32, #tpu.memory_space<vmem>>, vector<1x8x256xf32>,
    %c1_77 = arith.constant 1 : index
    %c0_78 = arith.constant 0 : index
    %c0_79 = arith.constant 0 : index
    %115 = vector.load %arg8[%c1_77, %c0_78, %c0_79] : memref<2x8x290xf32, #tpu.memory_space<vmem>>, vector<1x8x256xf32>
    %116 = vector.shape_cast %115 : vector<1x8x256xf32> to vector<8x256xf32>
    %cst_80 = arith.constant 0.000000e+00 : f32
    %117 = vector.broadcast %cst_80 : f32 to vector<8x256xf32>
    %118 = arith.select %38, %116, %117 : vector<8x256xi1>, vector<8x256xf32>
    %c0_81 = arith.constant 0 : index
    %c256 = arith.constant 256 : index
    %119 = vector.load %arg9[%c0_81, %c256] : memref<72x512xf32, #tpu.memory_space<vmem>>, vector<8x256xf32>
    tpu.vector_store %arg9[%c0_81, %c256], %118 {strides = array<i32>} : memref<72x512xf32, #tpu.memory_space<vmem>>, vector<8x256xf32>,
    %c1_82 = arith.constant 1 : index
    %c0_83 = arith.constant 0 : index
    %c1_84 = arith.constant 1 : index
    %120 = vector.load %arg8[%c1_82, %c0_83, %c1_84] : memref<2x8x290xf32, #tpu.memory_space<vmem>>, vector<1x8x256xf32>
    %121 = vector.shape_cast %120 : vector<1x8x256xf32> to vector<8x256xf32>
    %c8_85 = arith.constant 8 : index
    %c256_86 = arith.constant 256 : index
    %122 = vector.load %arg9[%c8_85, %c256_86] : memref<72x512xf32, #tpu.memory_space<vmem>>, vector<8x256xf32>
    tpu.vector_store %arg9[%c8_85, %c256_86], %121 {strides = array<i32>} : memref<72x512xf32, #tpu.memory_space<vmem>>, vector<8x256xf32>,
    %c1_87 = arith.constant 1 : index
    %c0_88 = arith.constant 0 : index
    %c2_89 = arith.constant 2 : index
    %123 = vector.load %arg8[%c1_87, %c0_88, %c2_89] : memref<2x8x290xf32, #tpu.memory_space<vmem>>, vector<1x8x256xf32>
    %124 = vector.shape_cast %123 : vector<1x8x256xf32> to vector<8x256xf32>
    %cst_90 = arith.constant 0.000000e+00 : f32
    %125 = vector.broadcast %cst_90 : f32 to vector<8x256xf32>
    %126 = arith.select %40, %124, %125 : vector<8x256xi1>, vector<8x256xf32>
    %c16_91 = arith.constant 16 : index
    %c256_92 = arith.constant 256 : index
    %127 = vector.load %arg9[%c16_91, %c256_92] : memref<72x512xf32, #tpu.memory_space<vmem>>, vector<8x256xf32>
    tpu.vector_store %arg9[%c16_91, %c256_92], %126 {strides = array<i32>} : memref<72x512xf32, #tpu.memory_space<vmem>>, vector<8x256xf32>,
    %c1_93 = arith.constant 1 : index
    %c0_94 = arith.constant 0 : index
    %c16_95 = arith.constant 16 : index
    %128 = vector.load %arg8[%c1_93, %c0_94, %c16_95] : memref<2x8x290xf32, #tpu.memory_space<vmem>>, vector<1x8x256xf32>
    %129 = vector.shape_cast %128 : vector<1x8x256xf32> to vector<8x256xf32>
    %cst_96 = arith.constant 0.000000e+00 : f32
    %130 = vector.broadcast %cst_96 : f32 to vector<8x256xf32>
    %131 = arith.select %38, %129, %130 : vector<8x256xi1>, vector<8x256xf32>
    %c24_97 = arith.constant 24 : index
    %c256_98 = arith.constant 256 : index
    %132 = vector.load %arg9[%c24_97, %c256_98] : memref<72x512xf32, #tpu.memory_space<vmem>>, vector<8x256xf32>
    tpu.vector_store %arg9[%c24_97, %c256_98], %131 {strides = array<i32>} : memref<72x512xf32, #tpu.memory_space<vmem>>, vector<8x256xf32>,
    %c1_99 = arith.constant 1 : index
    %c0_100 = arith.constant 0 : index
    %c17_101 = arith.constant 17 : index
    %133 = vector.load %arg8[%c1_99, %c0_100, %c17_101] : memref<2x8x290xf32, #tpu.memory_space<vmem>>, vector<1x8x256xf32>
    %134 = vector.shape_cast %133 : vector<1x8x256xf32> to vector<8x256xf32>
    %c32_102 = arith.constant 32 : index
    %c256_103 = arith.constant 256 : index
    %135 = vector.load %arg9[%c32_102, %c256_103] : memref<72x512xf32, #tpu.memory_space<vmem>>, vector<8x256xf32>
    tpu.vector_store %arg9[%c32_102, %c256_103], %134 {strides = array<i32>} : memref<72x512xf32, #tpu.memory_space<vmem>>, vector<8x256xf32>,
    %c1_104 = arith.constant 1 : index
    %c0_105 = arith.constant 0 : index
    %c18_106 = arith.constant 18 : index
    %136 = vector.load %arg8[%c1_104, %c0_105, %c18_106] : memref<2x8x290xf32, #tpu.memory_space<vmem>>, vector<1x8x256xf32>
    %137 = vector.shape_cast %136 : vector<1x8x256xf32> to vector<8x256xf32>
    %cst_107 = arith.constant 0.000000e+00 : f32
    %138 = vector.broadcast %cst_107 : f32 to vector<8x256xf32>
    %139 = arith.select %40, %137, %138 : vector<8x256xi1>, vector<8x256xf32>
    %c40_108 = arith.constant 40 : index
    %c256_109 = arith.constant 256 : index
    %140 = vector.load %arg9[%c40_108, %c256_109] : memref<72x512xf32, #tpu.memory_space<vmem>>, vector<8x256xf32>
    tpu.vector_store %arg9[%c40_108, %c256_109], %139 {strides = array<i32>} : memref<72x512xf32, #tpu.memory_space<vmem>>, vector<8x256xf32>,
    %c1_110 = arith.constant 1 : index
    %c0_111 = arith.constant 0 : index
    %c32_112 = arith.constant 32 : index
    %141 = vector.load %arg8[%c1_110, %c0_111, %c32_112] : memref<2x8x290xf32, #tpu.memory_space<vmem>>, vector<1x8x256xf32>
    %142 = vector.shape_cast %141 : vector<1x8x256xf32> to vector<8x256xf32>
    %cst_113 = arith.constant 0.000000e+00 : f32
    %143 = vector.broadcast %cst_113 : f32 to vector<8x256xf32>
    %144 = arith.select %38, %142, %143 : vector<8x256xi1>, vector<8x256xf32>
    %c48_114 = arith.constant 48 : index
    %c256_115 = arith.constant 256 : index
    %145 = vector.load %arg9[%c48_114, %c256_115] : memref<72x512xf32, #tpu.memory_space<vmem>>, vector<8x256xf32>
    tpu.vector_store %arg9[%c48_114, %c256_115], %144 {strides = array<i32>} : memref<72x512xf32, #tpu.memory_space<vmem>>, vector<8x256xf32>,
    %c1_116 = arith.constant 1 : index
    %c0_117 = arith.constant 0 : index
    %c33_118 = arith.constant 33 : index
    %146 = vector.load %arg8[%c1_116, %c0_117, %c33_118] : memref<2x8x290xf32, #tpu.memory_space<vmem>>, vector<1x8x256xf32>
    %147 = vector.shape_cast %146 : vector<1x8x256xf32> to vector<8x256xf32>
    %c56_119 = arith.constant 56 : index
    %c256_120 = arith.constant 256 : index
    %148 = vector.load %arg9[%c56_119, %c256_120] : memref<72x512xf32, #tpu.memory_space<vmem>>, vector<8x256xf32>
    tpu.vector_store %arg9[%c56_119, %c256_120], %147 {strides = array<i32>} : memref<72x512xf32, #tpu.memory_space<vmem>>, vector<8x256xf32>,
    %c1_121 = arith.constant 1 : index
    %c0_122 = arith.constant 0 : index
    %c34_123 = arith.constant 34 : index
    %149 = vector.load %arg8[%c1_121, %c0_122, %c34_123] : memref<2x8x290xf32, #tpu.memory_space<vmem>>, vector<1x8x256xf32>
    %150 = vector.shape_cast %149 : vector<1x8x256xf32> to vector<8x256xf32>
    %cst_124 = arith.constant 0.000000e+00 : f32
    %151 = vector.broadcast %cst_124 : f32 to vector<8x256xf32>
    %152 = arith.select %40, %150, %151 : vector<8x256xi1>, vector<8x256xf32>
    %c64_125 = arith.constant 64 : index
    %c256_126 = arith.constant 256 : index
    %153 = vector.load %arg9[%c64_125, %c256_126] : memref<72x512xf32, #tpu.memory_space<vmem>>, vector<8x256xf32>
    tpu.vector_store %arg9[%c64_125, %c256_126], %152 {strides = array<i32>} : memref<72x512xf32, #tpu.memory_space<vmem>>, vector<8x256xf32>,
    %c0_127 = arith.constant 0 : index
    %c0_128 = arith.constant 0 : index
    %154 = vector.load %arg5[%c0_127, %c0_128] : memref<8x72xf32, #tpu.memory_space<vmem>>, vector<8x72xf32>
    %c0_129 = arith.constant 0 : index
    %c0_130 = arith.constant 0 : index
    %155 = vector.load %arg9[%c0_129, %c0_130] : memref<72x512xf32, #tpu.memory_space<vmem>>, vector<72x512xf32>
    %cst_131 = arith.constant dense<0.000000e+00> : vector<8x512xf32>
    %156 = tpu.matmul %154, %155, %cst_131 {dimension_numbers = #tpu.dot_dimension_numbers<[1], [0], [0], [1], [0, 0, 1, 1], [], []>} : vector<8x72xf32>, vector<72x512xf32>, vector<8x512xf32> -> vector<8x512xf32>
    %157 = vector.extract_strided_slice %156 {offsets = [0, 0], sizes = [8, 256], strides = [1, 1]} : vector<8x512xf32> to vector<8x256xf32>
    %c0_132 = arith.constant 0 : index
    %c0_133 = arith.constant 0 : index
    %c0_134 = arith.constant 0 : index
    %158 = vector.load %arg6[%c0_132, %c0_133, %c0_134] : memref<2x8x256xf32, #tpu.memory_space<vmem>>, vector<1x8x256xf32>
    %159 = vector.shape_cast %158 : vector<1x8x256xf32> to vector<8x256xf32>
    %160 = vector.shape_cast %157 : vector<8x256xf32> to vector<1x8x256xf32>
    tpu.vector_store %arg6[%c0_132, %c0_133, %c0_134], %160 {strides = array<i32>} : memref<2x8x256xf32, #tpu.memory_space<vmem>>, vector<1x8x256xf32>,
    %161 = vector.extract_strided_slice %156 {offsets = [0, 256], sizes = [8, 256], strides = [1, 1]} : vector<8x512xf32> to vector<8x256xf32>
    %c1_135 = arith.constant 1 : index
    %c0_136 = arith.constant 0 : index
    %c0_137 = arith.constant 0 : index
    %162 = vector.load %arg6[%c1_135, %c0_136, %c0_137] : memref<2x8x256xf32, #tpu.memory_space<vmem>>, vector<1x8x256xf32>
    %163 = vector.shape_cast %162 : vector<1x8x256xf32> to vector<8x256xf32>
    %164 = vector.shape_cast %161 : vector<8x256xf32> to vector<1x8x256xf32>
    tpu.vector_store %arg6[%c1_135, %c0_136, %c0_137], %164 {strides = array<i32>} : memref<2x8x256xf32, #tpu.memory_space<vmem>>, vector<1x8x256xf32>,
    %cst_138 = arith.constant dense<0.000000e+00> : vector<8xf32>
    %165 = vector.multi_reduction <add>, %156, %cst_138 [1] : vector<8x512xf32> to vector<8xf32>
    %166 = vector.shape_cast %165 : vector<8xf32> to vector<8x1xf32>
    %c0_139 = arith.constant 0 : index
    %c0_140 = arith.constant 0 : index
    %c0_141 = arith.constant 0 : index
    %167 = vector.load %arg7[%c0_139, %c0_140, %c0_141] : memref<1x8x2xf32, #tpu.memory_space<vmem>>, vector<1x8x1xf32>
    %168 = vector.shape_cast %167 : vector<1x8x1xf32> to vector<8x1xf32>
    %169 = vector.shape_cast %166 : vector<8x1xf32> to vector<1x8x1xf32>
    tpu.vector_store %arg7[%c0_139, %c0_140, %c0_141], %169 {strides = array<i32>} : memref<1x8x2xf32, #tpu.memory_space<vmem>>, vector<1x8x1xf32>,
    %170 = arith.mulf %156, %156 : vector<8x512xf32>
    %cst_142 = arith.constant dense<0.000000e+00> : vector<8xf32>
    %171 = vector.multi_reduction <add>, %170, %cst_142 [1] : vector<8x512xf32> to vector<8xf32>
    %172 = vector.shape_cast %171 : vector<8xf32> to vector<8x1xf32>
    %c0_143 = arith.constant 0 : index
    %c0_144 = arith.constant 0 : index
    %c1_145 = arith.constant 1 : index
    %173 = vector.load %arg7[%c0_143, %c0_144, %c1_145] : memref<1x8x2xf32, #tpu.memory_space<vmem>>, vector<1x8x1xf32>
    %174 = vector.shape_cast %173 : vector<1x8x1xf32> to vector<8x1xf32>
    %175 = vector.shape_cast %172 : vector<8x1xf32> to vector<1x8x1xf32>
    tpu.vector_store %arg7[%c0_143, %c0_144, %c1_145], %175 {strides = array<i32>} : memref<1x8x2xf32, #tpu.memory_space<vmem>>, vector<1x8x1xf32>,
    return
  }
  func.func @transform_0(%arg0: i32) -> (i32, i32, i32) {
    %c0_i32 = arith.constant 0 : i32
    %c0_i32_0 = arith.constant 0 : i32
    %c0_i32_1 = arith.constant 0 : i32
    return %arg0, %c0_i32, %c0_i32_0 : i32, i32, i32
  }
  func.func @transform_1(%arg0: i32) -> (i32, i32, i32) {
    %c0_i32 = arith.constant 0 : i32
    %c0_i32_0 = arith.constant 0 : i32
    %c0_i32_1 = arith.constant 0 : i32
    %c0_i32_2 = arith.constant 0 : i32
    return %c0_i32, %c0_i32_0, %c0_i32_1 : i32, i32, i32
  }
  func.func @transform_2(%arg0: i32) -> (i32, i32) {
    %c0_i32 = arith.constant 0 : i32
    %c0_i32_0 = arith.constant 0 : i32
    %c0_i32_1 = arith.constant 0 : i32
    return %c0_i32, %c0_i32_0 : i32, i32
  }
  func.func @transform_3(%arg0: i32) -> (i32, i32) {
    %c0_i32 = arith.constant 0 : i32
    %c0_i32_0 = arith.constant 0 : i32
    %c0_i32_1 = arith.constant 0 : i32
    return %c0_i32, %c0_i32_0 : i32, i32
  }
  func.func @transform_4(%arg0: i32) -> (i32, i32) {
    %c0_i32 = arith.constant 0 : i32
    %c0_i32_0 = arith.constant 0 : i32
    %c0_i32_1 = arith.constant 0 : i32
    return %c0_i32, %c0_i32_0 : i32, i32
  }
  func.func @transform_5(%arg0: i32) -> (i32, i32, i32) {
    %c0_i32 = arith.constant 0 : i32
    %c0_i32_0 = arith.constant 0 : i32
    %c0_i32_1 = arith.constant 0 : i32
    return %arg0, %c0_i32, %c0_i32_0 : i32, i32, i32
  }
  func.func @transform_6(%arg0: i32) -> (i32, i32, i32) {
    %c0_i32 = arith.constant 0 : i32
    %c0_i32_0 = arith.constant 0 : i32
    %c0_i32_1 = arith.constant 0 : i32
    return %arg0, %c0_i32, %c0_i32_0 : i32, i32, i32
  }
}

</mosaic_0001>

<bundles_post_ra>
// kernel: conv_block_forward.5
= control target key start
LH: loop header
LB: loop body
LE: loop exit
PB: predicated region body
PF: predicated region fallthrough
CT: control target
= control target key end

     0   :  { %s79_s17 = smov 1   ;;  %v80_v7 = vmov 0   ;;  %s81_s18 = smov 127   ;;  %s140_s1 = inlined_call_operand.vmem [shape: f32[1,8,2], index: 1, kind: input, shape index: {}]   ;;  %s141_s2 = inlined_call_operand.vmem [shape: f32[8,1], index: 2, kind: input, shape index: {}]   ;;  %s142_s3 = inlined_call_operand.vmem [shape: f32[8,1], index: 3, kind: input, shape index: {}]   ;;  %s143_s0 = inlined_call_operand.vmem [shape: f32[2,8,256], index: 0, kind: input, shape index: {}, may-alias: {0,4}]   ;;  %s144_s4 = inlined_call_operand.vmem [shape: f32[2,8,256], index: 4, kind: output, shape index: {}, may-alias: {0,4}]  }
   0x1   :  { %v17_v0 = vld [vmem:[%s140_s1] sm:$0xff]  ;;  %75 = vset.pattern.permute.xlu1 %v80_v7  ;;  %76 = vset.pattern.permute.xlu0 %v80_v7  ;;  %v39_v17 = vld [vmem:[%s143_s0 + $0x8] sm:$0xff]  ;;  %v40_v18 = vld [vmem:[%s143_s0 + $0x10] sm:$0xff] }
   0x2   :  { %v19_v1 = vmul.f32 0.001953125, %v17_v0  ;;  %v27_v9 = vld [vmem:[%s141_s2] sm:$0xff]  ;;  %v41_v19 = vld [vmem:[%s143_s0 + $0x18] sm:$0xff] }
   0x3   :  { %v35_v12 = vld [vmem:[%s142_s3] sm:$0xff] }
   0x4   :  { %v20_v2 = vmul.f32 %v19_v1, %v19_v1  ;;  %v38_v15 = vld [vmem:[%s143_s0] sm:$0xff] }
   0x6   :  { %22 = vrot.lane.b32.xlu0 %v20_v2, %s79_s17 }
  0x78   :  { %v23_v3 = vpop.permute.xlu0 %22 }
  0x79   :  { %v25_v4 = vsub.f32 %v19_v1, %v23_v3 }
  0x7b   :  { %v26_v5 = vmax.f32 %v25_v4, 0.0 }
  0x7d   :  { %v28_v6 = vadd.f32 1e-05, %v26_v5 }
  0x7f   :  { %77 = vrsqrt.f32 %v28_v6 }
  0x89   :  { %v78_v8 = vpop.eup %77 }
  0x8a   :  { %31 = vrot.lane.b32.xlu0 %v78_v8, %s81_s18 }
  0xfc   :  { %v32_v10 = vpop.permute.xlu0 %31 }
  0xfd   :  { %v34_v11 = vmul.f32 %v32_v10, %v27_v9 }
  0xff   :  { %v36_v13 = vmul.f32 %v34_v11, %v19_v1  ;;  %44 = vperm.xlu1 %75, %v34_v11  }
 0x101   :  { %v37_v14 = vsub.f32 %v35_v12, %v36_v13 }
 0x103   :  { %53 = vperm.xlu1 %75, %v37_v14  }
 0x17e   :  { %v45_v16 = vpop.permute.xlu1 %44 }
 0x17f   :  { %v47_v20 = vmul.f32 %v45_v16, %v38_v15  ;;  %v48_v21 = vmul.f32 %v45_v16, %v39_v17  ;;  %v49_v22 = vmul.f32 %v45_v16, %v40_v18  ;;  %v50_v23 = vmul.f32 %v45_v16, %v41_v19 }
 0x182   :  { %v54_v24 = vpop.permute.xlu1 %53 }
 0x183   :  { %v56_v25 = vadd.f32 %v54_v24, %v47_v20  ;;  %v57_v26 = vadd.f32 %v54_v24, %v48_v21  ;;  %v58_v27 = vadd.f32 %v54_v24, %v49_v22  ;;  %v59_v28 = vadd.f32 %v54_v24, %v50_v23 }
 0x185   :  { %v60_v29 = vmax.f32 %v56_v25, 0.0  ;;  %v61_v30 = vmax.f32 %v57_v26, 0.0  ;;  %v62_v31 = vmax.f32 %v58_v27, 0.0  ;;  %v63_v32 = vmax.f32 %v59_v28, 0.0 }
 0x187   :  { %64 = vst [vmem:[%s144_s4] sm:$0xff] %v60_v29  ;;  %65 = vst [vmem:[%s144_s4 + $0x8] sm:$0xff] %v61_v30 }
 0x188   :  { %66 = vst [vmem:[%s144_s4 + $0x10] sm:$0xff] %v62_v31  ;;  %67 = vst [vmem:[%s144_s4 + $0x18] sm:$0xff] %v63_v32 }

// kernel: conv_block_forward.4
= control target key start
LH: loop header
LB: loop body
LE: loop exit
PB: predicated region body
PF: predicated region fallthrough
CT: control target
= control target key end

     0   :  { %s877_s23 = smov 1   ;;  %v878_v7 = vmov 0   ;;  %s879_s24 = smov 127   ;;  %vm92_vm0 = vcmask 138240   ;;  %vm94_vm1 = vcmask 277640   ;;  %v880_v15 = vmov 0.0   ;;  %s1139_s1 = inlined_call_operand.vmem [shape: f32[1,8,2], index: 1, kind: input, shape index: {}]   ;;  %s1140_s2 = inlined_call_operand.vmem [shape: f32[8,1], index: 2, kind: input, shape index: {}]   ;;  %s1141_s3 = inlined_call_operand.vmem [shape: f32[8,1], index: 3, kind: input, shape index: {}]   ;;  %s1142_s0 = inlined_call_operand.vmem [shape: f32[2,8,256], index: 0, kind: input, shape index: {}]   ;;  %s1143_s4 = inlined_call_operand.vmem [shape: f32[8,72], index: 4, kind: input, shape index: {}]   ;;  %s1144_s5 = inlined_call_operand.vmem [shape: f32[2,8,256], index: 5, kind: output, shape index: {0}]   ;;  %s1145_s6 = inlined_call_operand.vmem [shape: f32[1,8,2], index: 6, kind: output, shape index: {1}]  }
   0x1   :  { %v22_v0 = vld [vmem:[%s1139_s1] sm:$0xff]  ;;  %768 = vset.pattern.permute.xlu1 %v878_v7  ;;  %874 = vset.pattern.permute.xlu0 %v878_v7  ;;  %95 = vst.msk [vmem:[#allocation2 + $0x10] sm:$0xff] %vm94_vm1, %v880_v15  ;;  %289 = vst.msk [vmem:[#allocation2 + $0x28] sm:$0xff] %vm94_vm1, %v880_v15  ;;  %v75_v18 = vld [vmem:[%s1142_s0 + $0x8] sm:$0xff]  ;;  %s881_s10 = smov 17   ;;  %vm106_vm2 = vcmask 1047688   ;;  %v43_v47 = vlaneseq }
   0x2   :  { %v24_v1 = vmul.f32 0.001953125, %v22_v0  ;;  %v32_v9 = vld [vmem:[%s1140_s2] sm:$0xff]  ;;  %93 = vst.msk [vmem:[#allocation2] sm:$0xff] %vm92_vm0, %v880_v15  ;;  %288 = vst.msk [vmem:[#allocation2 + $0x18] sm:$0xff] %vm92_vm0, %v880_v15  ;;  %568 = vmatprep.mubr.f32.mxu0 %v880_v15  ;;  %639 = vmatprep.mubr.f32.mxu1 %v880_v15  ;;  %v677_v19 = vld [vmem:[%s1142_s0 + $0x10] sm:$0xff]  ;;  %s883_s11 = smov 111  }
   0x3   :  { %v40_v12 = vld [vmem:[%s1141_s3] sm:$0xff]  ;;  %v678_v20 = vld [vmem:[%s1142_s0 + $0x18] sm:$0xff]  ;;  %s884_s12 = smov 112   ;;  %s885_s13 = smov 96   ;;  %v44_v50 = vand.u32 127, %v43_v47  ;;  %vm128_vm4 = vcmask 1039360  }
   0x4   :  { %v25_v2 = vmul.f32 %v24_v1, %v24_v1  ;;  %v74_v17 = vld [vmem:[%s1142_s0] sm:$0xff]  ;;  %s882_s0 = smov 126   ;;  %s886_s14 = smov 110   ;;  %vm889_vm6 = vmmov 1   ;;  %vm147_vm9 = vcmask 1031168   ;;  %vm168_vm10 = vcmask 916480  }
   0x5   :  { %s887_s15 = smov 95   ;;  %s888_s16 = smov 94   ;;  %v45_v53 = vadd.s32 128, %v44_v50  ;;  %v50_v57 = vand.u32 15, %v44_v50  ;;  %vm189_vm12 = vcmask 908288  }
   0x6   :  { %27 = vrot.lane.b32.xlu0 %v25_v2, %s877_s23 }
   0x7   :  { %v57_v56 = vand.u32 15, %v45_v53  ;;  %vm988_vm5 = vcmp.ge.s32.totalorder %v50_v57, 1  ;;  %vm1034_vm14 = vcmp.le.s32.totalorder %v50_v57, 14 }
   0x8   :  { %vm1005_vm8 = vmpackc.low %vm889_vm6, %vm988_vm5 }
   0x9   :  { %vm984_vm3 = vcmp.ge.s32.totalorder %v57_v56, 1  ;;  %vm1018_vm11 = vcmp.le.s32.totalorder %v57_v56, 14  ;;  %vm717_vm15 = vmpackc.low %vm988_vm5, %vm1034_vm14  ;;  %vm269_vm5 = vcmask 769024  }
   0xa   :  { %vm996_vm7 = vmpackc.low %vm889_vm6, %vm984_vm3 }
   0xb   :  { %vm714_vm13 = vmpackc.low %vm984_vm3, %vm1018_vm11 }
   0xc   :  { %vm1065_vm1 = vmpackc.low %vm1018_vm11, %vm889_vm6 }
   0xd   :  { %vm723_vm3 = vmpackc.low %vm1034_vm14, %vm889_vm6  ;;  %vm500_vm6 = vcmask 588800  }
  0x78   :  { %v28_v3 = vpop.permute.xlu0 %27 }
  0x79   :  { %v30_v4 = vsub.f32 %v24_v1, %v28_v3 }
  0x7b   :  { %v31_v5 = vmax.f32 %v30_v4, 0.0 }
  0x7d   :  { %v33_v6 = vadd.f32 1e-05, %v31_v5 }
  0x7f   :  { %875 = vrsqrt.f32 %v33_v6 }
  0x89   :  { %v876_v8 = vpop.eup %875 }
  0x8a   :  { %36 = vrot.lane.b32.xlu0 %v876_v8, %s879_s24 }
  0xfc   :  { %v37_v10 = vpop.permute.xlu0 %36 }
  0xfd   :  { %v39_v11 = vmul.f32 %v37_v10, %v32_v9 }
  0xff   :  { %v41_v13 = vmul.f32 %v39_v11, %v24_v1  ;;  %78 = vperm.xlu1 %768, %v39_v11  }
 0x101   :  { %v42_v14 = vsub.f32 %v40_v12, %v41_v13 }
 0x103   :  { %85 = vperm.xlu1 %768, %v42_v14  }
 0x17e   :  { %v79_v16 = vpop.permute.xlu1 %78 }
 0x17f   :  { %v81_v21 = vmul.f32 %v79_v16, %v74_v17  ;;  %v82_v22 = vmul.f32 %v79_v16, %v75_v18  ;;  %v281_v24 = vmul.f32 %v677_v19, %v79_v16  ;;  %v282_v25 = vmul.f32 %v678_v20, %v79_v16 }
 0x182   :  { %v86_v23 = vpop.permute.xlu1 %85 }
 0x183   :  { %v89_v26 = vadd.f32 %v86_v23, %v82_v22  ;;  %v88_v27 = vadd.f32 %v86_v23, %v81_v21  ;;  %v284_v30 = vadd.f32 %v282_v25, %v86_v23  ;;  %v283_v31 = vadd.f32 %v281_v24, %v86_v23 }
 0x185   :  { %v91_v28 = vmax.f32 %v89_v26, 0.0  ;;  %v90_v29 = vmax.f32 %v88_v27, 0.0  ;;  %v286_v32 = vmax.f32 %v284_v30, 0.0  ;;  %v285_v33 = vmax.f32 %v283_v31, 0.0 }
 0x187   :  { %100 = vrot.lane.b32.xlu1 %v91_v28, %s881_s10  ;;  %98 = vrot.lane.b32.xlu0 %v90_v29, %s881_s10 }
 0x18b   :  { %294 = vrot.lane.b32.xlu1 %v286_v32, %s881_s10  ;;  %292 = vrot.lane.b32.xlu0 %v285_v33, %s881_s10 }
 0x1f9   :  { %v101_v34 = vpop.permute.xlu1 %100  ;;  %v99_v35 = vpop.permute.xlu0 %98 }
 0x1fa   :  { %109 = vst.msk [vmem:[#allocation2 + $0x10] sm:$0xff] %vm92_vm0, %v101_v34  ;;  %v951_v36 = vsel %vm92_vm0, %v99_v35, %v101_v34 }
 0x1fb   :  { %107 = vst.msk [vmem:[#allocation2] sm:$0xff] %vm106_vm2, %v99_v35 }
 0x1fd   :  { %v295_v37 = vpop.permute.xlu1 %294  ;;  %v293_v38 = vpop.permute.xlu0 %292 }
 0x1fe   :  { %302 = vst.msk [vmem:[#allocation2 + $0x28] sm:$0xff] %vm92_vm0, %v295_v37  ;;  %v955_v39 = vsel %vm92_vm0, %v293_v38, %v295_v37  ;;  %vm208_vm0 = vcmask 900096  }
 0x1ff   :  { %300 = vst.msk [vmem:[#allocation2 + $0x18] sm:$0xff] %vm106_vm2, %v293_v38  ;;  %vm229_vm2 = vcmask 785408  }
 0x201   :  { %v118_v45 = vld [vmem:[#allocation2 + $0x10] sm:$0xff] }
 0x202   :  { %v961_v43 = vld [vmem:[#allocation2] sm:$0xff]  ;;  %v804_v46 = vpack.i.bf16 %v118_v45, %v951_v36 }
 0x203   :  { %v809_v44 = vpack.i.bf16 %v955_v39, %v961_v43 }
 0x205   :  { %v329_v41 = vld [vmem:[#allocation2 + $0x28] sm:$0xff] }
 0x206   :  { %v957_v40 = vld [vmem:[#allocation2 + $0x18] sm:$0xff] }
 0x207   :  { %v774_v42 = vpack.i.bf16 %v957_v40, %v329_v41 }
 0x209   :  { %775 = vrot.lane.b32.xlu1 %v774_v42, %s882_s0  ;;  %770 = vrot.lane.b32.xlu0 %v774_v42, %s879_s24 }
 0x20d   :  { %785 = vrot.lane.b32.xlu1 %v774_v42, %s883_s11  ;;  %780 = vrot.lane.b32.xlu0 %v774_v42, %s884_s12 }
 0x211   :  { %795 = vrot.lane.b32.xlu1 %v774_v42, %s885_s13  ;;  %790 = vrot.lane.b32.xlu0 %v774_v42, %s886_s14 }
 0x215   :  { %800 = vrot.lane.b32.xlu0 %v774_v42, %s887_s15  ;;  %810 = vrot.lane.b32.xlu1 %v809_v44, %s879_s24 }
 0x219   :  { %805 = vrot.lane.b32.xlu0 %v804_v46, %s879_s24  ;;  %815 = vrot.lane.b32.xlu1 %v804_v46, %s882_s0 }
 0x21d   :  { %820 = vrot.lane.b32.xlu0 %v804_v46, %s884_s12  ;;  %825 = vrot.lane.b32.xlu1 %v809_v44, %s882_s0 }
 0x221   :  { %830 = vrot.lane.b32.xlu0 %v809_v44, %s884_s12  ;;  %835 = vrot.lane.b32.xlu1 %v804_v46, %s883_s11 }
 0x225   :  { %840 = vrot.lane.b32.xlu0 %v804_v46, %s886_s14  ;;  %845 = vrot.lane.b32.xlu1 %v809_v44, %s883_s11 }
 0x229   :  { %850 = vrot.lane.b32.xlu0 %v809_v44, %s886_s14  ;;  %855 = vrot.lane.b32.xlu1 %v804_v46, %s885_s13 }
 0x22d   :  { %860 = vrot.lane.b32.xlu0 %v804_v46, %s887_s15  ;;  %865 = vrot.lane.b32.xlu1 %v809_v44, %s885_s13 }
 0x231   :  { %870 = vrot.lane.b32.xlu0 %v809_v44, %s887_s15  ;;  %263 = vrot.lane.b32.xlu1 %v961_v43, %s888_s16 }
 0x235   :  { %267 = vrot.lane.b32.xlu0 %v118_v45, %s888_s16  ;;  %265 = vrot.lane.b32.xlu1 %v951_v36, %s888_s16 }
 0x239   :  { %451 = vrot.lane.b32.xlu0 %v955_v39, %s888_s16  ;;  %453 = vrot.lane.b32.xlu1 %v329_v41, %s888_s16 }
 0x23d   :  { %449 = vrot.lane.b32.xlu0 %v957_v40, %s888_s16 }
 0x27b   :  { %v972_v48 = vpop.permute.xlu1 %775  ;;  %v771_v49 = vpop.permute.xlu0 %770 }
 0x27c   :  { %v773_v61 = vunpack.i.h.bf16 %v771_v49  ;;  %v772_v62 = vunpack.i.l.bf16 %v771_v49  ;;  %v778_v27 = vunpack.i.h.bf16 %v972_v48  ;;  %v777_v28 = vunpack.i.l.bf16 %v972_v48 }
 0x27f   :  { %v974_v51 = vpop.permute.xlu1 %785  ;;  %v976_v52 = vpop.permute.xlu0 %780 }
 0x280   :  { %v783_v33 = vunpack.i.h.bf16 %v976_v52  ;;  %v782_v34 = vunpack.i.l.bf16 %v976_v52  ;;  %v787_v60 = vunpack.i.l.bf16 %v974_v51 }
 0x283   :  { %v978_v54 = vpop.permute.xlu1 %795  ;;  %v980_v55 = vpop.permute.xlu0 %790 }
 0x287   :  { %v982_v58 = vpop.permute.xlu0 %800  ;;  %v811_v59 = vpop.permute.xlu1 %810 }
 0x288   :  { %v813_v63 = vunpack.i.h.bf16 %v811_v59  ;;  %v812_v9 = vunpack.i.l.bf16 %v811_v59 }
 0x28a   :  { %v322_v1 = vsel %vm128_vm4, %v813_v63, %v772_v62  ;;  %v321_v3 = vsel %vm128_vm4, %v773_v61, %v813_v63  ;;  %v788_v62 = vunpack.i.h.bf16 %v974_v51 }
 0x28b   :  { %v806_v4 = vpop.permute.xlu0 %805  ;;  %v816_v5 = vpop.permute.xlu1 %815  ;;  %v731_v6 = vpack.c.bf16 %v322_v1, %v955_v39  ;;  %v734_v8 = vpack.c.bf16 %v321_v3, %v957_v40  ;;  %v793_v3 = vunpack.i.h.bf16 %v980_v55 }
 0x28c   :  { %v808_v10 = vunpack.i.h.bf16 %v806_v4  ;;  %v807_v11 = vunpack.i.l.bf16 %v806_v4  ;;  %v818_v12 = vunpack.i.h.bf16 %v816_v5  ;;  %v817_v13 = vunpack.i.l.bf16 %v816_v5 }
 0x28d   :  { %733 = vmatprep.subr.msk.bf16.mxu1 %vm996_vm7, %v731_v6  ;;  %v792_v4 = vunpack.i.l.bf16 %v980_v55 }
 0x28e   :  { %736 = vmatpush1.bf16.msk.msra.mxu1 %vm1005_vm8, %v734_v8  ;;  %v130_v14 = vsel %vm128_vm4, %v807_v11, %v808_v10  ;;  %v129_v15 = vsel %vm128_vm4, %v812_v9, %v807_v11  ;;  %v149_v25 = vsel %vm147_vm9, %v817_v13, %v818_v12  ;;  %vm250_vm4 = vcmask 777216  }
 0x28f   :  { %v821_v16 = vpop.permute.xlu0 %820  ;;  %v826_v17 = vpop.permute.xlu1 %825  ;;  %v707_v18 = vpack.c.bf16 %v130_v14, %v951_v36  ;;  %v710_v19 = vpack.c.bf16 %v129_v15, %v961_v43 }
 0x290   :  { %v823_v21 = vunpack.i.h.bf16 %v821_v16  ;;  %v822_v22 = vunpack.i.l.bf16 %v821_v16  ;;  %v828_v23 = vunpack.i.h.bf16 %v826_v17  ;;  %v827_v24 = vunpack.i.l.bf16 %v826_v17 }
 0x291   :  { %709 = vmatprep.subr.msk.bf16.mxu0 %vm996_vm7, %v707_v18 }
 0x292   :  { %v170_v26 = vsel %vm168_vm10, %v822_v22, %v823_v21  ;;  %712 = vmatpush1.bf16.msk.msra.mxu0 %vm1005_vm8, %v710_v19  ;;  %v339_v37 = vsel %vm147_vm9, %v778_v27, %v828_v23  ;;  %v340_v38 = vsel %vm147_vm9, %v828_v23, %v777_v28  ;;  %v148_v39 = vsel %vm147_vm9, %v827_v24, %v817_v13 }
 0x293   :  { %v713_v29 = vpack.c.bf16 %v170_v26, %v149_v25  ;;  %v831_v30 = vpop.permute.xlu0 %830  ;;  %v836_v31 = vpop.permute.xlu1 %835  ;;  %v798_v26 = vunpack.i.h.bf16 %v978_v54  ;;  %v797_v27 = vunpack.i.l.bf16 %v978_v54 }
 0x294   :  { %v833_v35 = vunpack.i.h.bf16 %v831_v30  ;;  %v832_v36 = vunpack.i.l.bf16 %v831_v30  ;;  %v838_v40 = vunpack.i.h.bf16 %v836_v31  ;;  %v837_v44 = vunpack.i.l.bf16 %v836_v31 }
 0x295   :  { %715 = vmatprep.subr.msk.bf16.mxu0 %vm714_vm13, %v713_v29  ;;  %v803_v31 = vunpack.i.h.bf16 %v982_v58 }
 0x296   :  { %v359_v41 = vsel %vm168_vm10, %v783_v33, %v833_v35  ;;  %v360_v42 = vsel %vm168_vm10, %v833_v35, %v782_v34  ;;  %v169_v43 = vsel %vm168_vm10, %v832_v36, %v822_v22  ;;  %v191_v57 = vsel %vm189_vm12, %v837_v44, %v838_v40 }
 0x297   :  { %v716_v45 = vpack.c.bf16 %v169_v43, %v148_v39  ;;  %v737_v46 = vpack.c.bf16 %v360_v42, %v340_v38  ;;  %v740_v47 = vpack.c.bf16 %v359_v41, %v339_v37  ;;  %v841_v48 = vpop.permute.xlu0 %840  ;;  %v846_v49 = vpop.permute.xlu1 %845  ;;  %v802_v33 = vunpack.i.l.bf16 %v982_v58 }
 0x298   :  { %v843_v50 = vunpack.i.h.bf16 %v841_v48  ;;  %v842_v52 = vunpack.i.l.bf16 %v841_v48  ;;  %v848_v53 = vunpack.i.h.bf16 %v846_v49  ;;  %v847_v56 = vunpack.i.l.bf16 %v846_v49  ;;  %v463_v48 = vld [vmem:[%s1143_s4] sm:$0xff] }
 0x299   :  { %718 = vmatpush1.bf16.msk.msra.mxu0 %vm717_vm15, %v716_v45  ;;  %739 = vmatprep.subr.msk.bf16.mxu1 %vm714_vm13, %v737_v46 }
 0x29a   :  { %v210_v59 = vsel %vm208_vm0, %v842_v52, %v843_v50  ;;  %742 = vmatpush1.bf16.msk.msra.mxu1 %vm717_vm15, %v740_v47  ;;  %v379_v8 = vsel %vm189_vm12, %v788_v62, %v848_v53  ;;  %v380_v9 = vsel %vm189_vm12, %v848_v53, %v787_v60  ;;  %v190_v10 = vsel %vm189_vm12, %v847_v56, %v837_v44 }
 0x29b   :  { %v719_v63 = vpack.c.bf16 %v210_v59, %v191_v57  ;;  %v851_v0 = vpop.permute.xlu0 %850  ;;  %v856_v1 = vpop.permute.xlu1 %855 }
 0x29c   :  { %v853_v5 = vunpack.i.h.bf16 %v851_v0  ;;  %v852_v6 = vunpack.i.l.bf16 %v851_v0  ;;  %v858_v11 = vunpack.i.h.bf16 %v856_v1  ;;  %v857_v14 = vunpack.i.l.bf16 %v856_v1 }
 0x29d   :  { %721 = vmatprep.subr.msk.bf16.mxu0 %vm1065_vm1, %v719_v63 }
 0x29e   :  { %v397_v51 = vsel %vm208_vm0, %v793_v3, %v853_v5  ;;  %v398_v12 = vsel %vm208_vm0, %v853_v5, %v792_v4  ;;  %v209_v13 = vsel %vm208_vm0, %v852_v6, %v842_v52  ;;  %v231_v23 = vsel %vm229_vm2, %v857_v14, %v858_v11 }
 0x29f   :  { %v722_v55 = vpack.c.bf16 %v209_v13, %v190_v10  ;;  %v743_v15 = vpack.c.bf16 %v398_v12, %v380_v9  ;;  %v746_v16 = vpack.c.bf16 %v397_v51, %v379_v8  ;;  %v861_v17 = vpop.permute.xlu0 %860  ;;  %v866_v18 = vpop.permute.xlu1 %865 }
 0x2a0   :  { %v863_v19 = vunpack.i.h.bf16 %v861_v17  ;;  %v862_v21 = vunpack.i.l.bf16 %v861_v17  ;;  %v868_v22 = vunpack.i.h.bf16 %v866_v18  ;;  %v867_v25 = vunpack.i.l.bf16 %v866_v18 }
 0x2a1   :  { %724 = vmatpush1.bf16.msk.msra.mxu0 %vm723_vm3, %v722_v55  ;;  %745 = vmatprep.subr.msk.bf16.mxu1 %vm1065_vm1, %v743_v15 }
 0x2a2   :  { %v252_v24 = vsel %vm250_vm4, %v862_v21, %v863_v19  ;;  %748 = vmatpush1.bf16.msk.msra.mxu1 %vm723_vm3, %v746_v16  ;;  %v417_v36 = vsel %vm229_vm2, %v798_v26, %v868_v22  ;;  %v418_v37 = vsel %vm229_vm2, %v868_v22, %v797_v27  ;;  %v230_v38 = vsel %vm229_vm2, %v867_v25, %v857_v14 }
 0x2a3   :  { %v725_v28 = vpack.c.bf16 %v252_v24, %v231_v23  ;;  %v871_v29 = vpop.permute.xlu0 %870  ;;  %v264_v30 = vpop.permute.xlu1 %263 }
 0x2a4   :  { %v873_v34 = vunpack.i.h.bf16 %v871_v29  ;;  %v872_v35 = vunpack.i.l.bf16 %v871_v29 }
 0x2a5   :  { %727 = vmatprep.subr.msk.bf16.mxu0 %vm996_vm7, %v725_v28 }
 0x2a6   :  { %v437_v54 = vsel %vm250_vm4, %v803_v31, %v873_v34  ;;  %v438_v39 = vsel %vm250_vm4, %v873_v34, %v802_v33  ;;  %v251_v40 = vsel %vm250_vm4, %v872_v35, %v862_v21 }
 0x2a7   :  { %v728_v41 = vpack.c.bf16 %v251_v40, %v230_v38  ;;  %v749_v58 = vpack.c.bf16 %v438_v39, %v418_v37  ;;  %v752_v42 = vpack.c.bf16 %v437_v54, %v417_v36  ;;  %v268_v43 = vpop.permute.xlu0 %267  ;;  %v266_v44 = vpop.permute.xlu1 %265 }
 0x2a8   :  { %v271_v45 = vsel %vm269_vm5, %v266_v44, %v268_v43  ;;  %v270_v49 = vsel %vm269_vm5, %v264_v30, %v266_v44 }
 0x2a9   :  { %730 = vmatpush1.bf16.msk.msra.mxu0 %vm1005_vm8, %v728_v41  ;;  %751 = vmatprep.subr.msk.bf16.mxu1 %vm996_vm7, %v749_v58  ;;  %vm656_vm7 = vcmask 7168  }
 0x2aa   :  { %693 = vmatprep.subr.msk.mxu0 %vm1018_vm11, %v271_v45  ;;  %754 = vmatpush1.bf16.msk.msra.mxu1 %vm1005_vm8, %v752_v42  ;;  %vm667_vm8 = vcmask 15368  }
 0x2ab   :  { %v452_v46 = vpop.permute.xlu0 %451  ;;  %v454_v47 = vpop.permute.xlu1 %453 }
 0x2ac   :  { %v456_v50 = vsel %vm269_vm5, %v452_v46, %v454_v47 }
 0x2ad   :  { %694 = vmatpush1.msk.msra.mxu0 %vm1034_vm14, %v270_v49  ;;  %705 = vmatprep.subr.msk.mxu1 %vm1018_vm11, %v456_v50 }
 0x2ae   :  { %679 = vmatmul.mubr.msk.f32.vlgmr.msra.gmra.mrb[0].mxu0 %vm500_vm6, %v463_v48 }
 0x2af   :  { %v450_v2 = vpop.permute.xlu0 %449 }
 0x2b0   :  { %v455_v7 = vsel %vm269_vm5, %v450_v2, %v452_v46 }
 0x2b1   :  { %706 = vmatpush1.msk.msra.mxu1 %vm1034_vm14, %v455_v7 }
 0x2b2   :  { %680 = vmatmul.mubr.msk.f32.vlgmr.msra.gmra.mrb[0].mxu1 %vm500_vm6, %v463_v48 }
 0x381   :  { %v570_v52 = vpop.f32.mrb[0].mxu0 }
 0x382   :  { %646 = vst [vmem:[%s1144_s5] sm:$0xff] %v570_v52  ;;  %v658_v53 = vmul.f32 %v570_v52, %v570_v52  ;;  %v572_v56 = vpop.f32.mrb[1].mxu0 }
 0x383   :  { %647 = vst [vmem:[%s1144_s5 + $0x8] sm:$0xff] %v572_v56  ;;  %v651_v20 = vadd.f32 %v572_v56, %v570_v52  ;;  %v659_v57 = vmul.f32 %v572_v56, %v572_v56 }
 0x385   :  { %v662_v59 = vadd.f32 %v659_v57, %v658_v53  ;;  %v641_v61 = vpop.f32.mrb[0].mxu1 }
 0x386   :  { %681 = vst [vmem:[%s1144_s5 + $0x10] sm:$0xff] %v641_v61  ;;  %v660_v32 = vmul.f32 %v641_v61, %v641_v61  ;;  %v643_v62 = vpop.f32.mrb[1].mxu1  ;;  %v652_v60 = vadd.f32 %v651_v20, %v641_v61 }
 0x387   :  { %682 = vst [vmem:[%s1144_s5 + $0x18] sm:$0xff] %v643_v62  ;;  %v661_v63 = vmul.f32 %v643_v62, %v643_v62 }
 0x388   :  { %v653_v0 = vadd.f32 %v652_v60, %v643_v62  ;;  %v663_v1 = vadd.f32 %v662_v59, %v660_v32 }
 0x38a   :  { %654 = vadd.xlane.f32.xlu1 %v653_v0  ;;  %v664_v3 = vadd.f32 %v663_v1, %v661_v63 }
 0x38c   :  { %665 = vadd.xlane.f32.xlu0 %v664_v3 }
 0x417   :  { %v655_v4 = vpop.xlane.xlu1 %654 }
 0x418   :  { %657 = vst.msk [vmem:[%s1145_s6] sm:$0xff] %vm656_vm7, %v655_v4 }
 0x419   :  { %v666_v5 = vpop.xlane.xlu0 %665 }
 0x41a   :  { %668 = vst.msk [vmem:[%s1145_s6] sm:$0xff] %vm667_vm8, %v666_v5 }

// kernel: conv_block_forward.3
= control target key start
LH: loop header
LB: loop body
LE: loop exit
PB: predicated region body
PF: predicated region fallthrough
CT: control target
= control target key end

     0   :  { %vm48_vm0 = vcmask 1043456   ;;  %vm51_vm1 = vcmask 138240   ;;  %v829_v2 = vmov 0.0   ;;  %vm53_vm2 = vcmask 277640   ;;  %s830_s16 = smov 17   ;;  %s832_s17 = smov 127   ;;  %s1059_s0 = inlined_call_operand.vmem [shape: f32[2,4,256], index: 0, kind: input, shape index: {}]   ;;  %s1060_s1 = inlined_call_operand.vmem [shape: f32[8,72], index: 1, kind: input, shape index: {}]   ;;  %s1061_s2 = inlined_call_operand.vmem [shape: f32[2,8,256], index: 2, kind: output, shape index: {0}]   ;;  %s1062_s3 = inlined_call_operand.vmem [shape: f32[1,8,2], index: 3, kind: output, shape index: {1}]  }
   0x1   :  { %v634_v0 = vld [vmem:[%s1059_s0 + $0x8] sm:$0xff]  ;;  %v44_v1 = vld [vmem:[%s1059_s0] sm:$0xff]  ;;  %245 = vst.msk [vmem:[#allocation2 + $0x18] sm:$0xff] %vm51_vm1, %v829_v2  ;;  %52 = vst.msk [vmem:[#allocation2] sm:$0xff] %vm51_vm1, %v829_v2  ;;  %525 = vmatprep.mubr.f32.mxu0 %v829_v2  ;;  %596 = vmatprep.mubr.f32.mxu1 %v829_v2  ;;  %vm65_vm3 = vcmask 1047688   ;;  %s831_s0 = smov 126   ;;  %v13_v22 = vlaneseq }
   0x2   :  { %v242_v3 = vsel %vm48_vm0, %v634_v0, 0.0  ;;  %v240_v4 = vcombine.high %v634_v0, %v634_v0  ;;  %v49_v5 = vsel %vm48_vm0, %v44_v1, 0.0  ;;  %v46_v6 = vcombine.high %v44_v1, %v44_v1  ;;  %246 = vst.msk [vmem:[#allocation2 + $0x28] sm:$0xff] %vm53_vm2, %v829_v2  ;;  %54 = vst.msk [vmem:[#allocation2 + $0x10] sm:$0xff] %vm53_vm2, %v829_v2  ;;  %s833_s18 = smov 111   ;;  %s834_s19 = smov 112  }
   0x3   :  { %249 = vrot.lane.b32.xlu1 %v242_v3, %s830_s16  ;;  %57 = vrot.lane.b32.xlu0 %v49_v5, %s830_s16  ;;  %s835_s20 = smov 96   ;;  %s836_s21 = smov 110   ;;  %v14_v25 = vand.u32 127, %v13_v22  ;;  %vm87_vm5 = vcmask 1039360   ;;  %vm839_vm7 = vmmov 1   ;;  %vm106_vm10 = vcmask 1031168  }
   0x4   :  { %v243_v7 = vsel %vm48_vm0, %v240_v4, 0.0  ;;  %v50_v8 = vsel %vm48_vm0, %v46_v6, 0.0  ;;  %s837_s22 = smov 95   ;;  %s838_s23 = smov 94   ;;  %vm127_vm11 = vcmask 916480   ;;  %vm148_vm13 = vcmask 908288  }
   0x5   :  { %v15_v28 = vadd.s32 128, %v14_v25  ;;  %v20_v32 = vand.u32 15, %v14_v25 }
   0x7   :  { %251 = vrot.lane.b32.xlu1 %v243_v7, %s830_s16  ;;  %59 = vrot.lane.b32.xlu0 %v50_v8, %s830_s16  ;;  %v27_v31 = vand.u32 15, %v15_v28  ;;  %vm908_vm6 = vcmp.ge.s32.totalorder %v20_v32, 1  ;;  %vm954_vm15 = vcmp.le.s32.totalorder %v20_v32, 14 }
   0x8   :  { %vm925_vm9 = vmpackc.low %vm839_vm7, %vm908_vm6 }
   0x9   :  { %vm904_vm4 = vcmp.ge.s32.totalorder %v27_v31, 1  ;;  %vm938_vm12 = vcmp.le.s32.totalorder %v27_v31, 14  ;;  %vm673_vm0 = vmpackc.low %vm908_vm6, %vm954_vm15  ;;  %vm228_vm6 = vcmask 769024  }
   0xa   :  { %vm916_vm8 = vmpackc.low %vm839_vm7, %vm904_vm4 }
   0xb   :  { %vm670_vm14 = vmpackc.low %vm904_vm4, %vm938_vm12 }
   0xc   :  { %vm985_vm2 = vmpackc.low %vm938_vm12, %vm839_vm7 }
   0xd   :  { %vm679_vm4 = vmpackc.low %vm954_vm15, %vm839_vm7  ;;  %vm457_vm7 = vcmask 588800  }
  0x75   :  { %v250_v9 = vpop.permute.xlu1 %249  ;;  %v58_v10 = vpop.permute.xlu0 %57 }
  0x76   :  { %257 = vst.msk [vmem:[#allocation2 + $0x18] sm:$0xff] %vm65_vm3, %v250_v9  ;;  %66 = vst.msk [vmem:[#allocation2] sm:$0xff] %vm65_vm3, %v58_v10  ;;  %vm188_vm3 = vcmask 785408  }
  0x79   :  { %v252_v11 = vpop.permute.xlu1 %251  ;;  %v60_v12 = vpop.permute.xlu0 %59 }
  0x7a   :  { %v873_v13 = vsel %vm51_vm1, %v250_v9, %v252_v11  ;;  %259 = vst.msk [vmem:[#allocation2 + $0x28] sm:$0xff] %vm51_vm1, %v252_v11  ;;  %v877_v14 = vsel %vm51_vm1, %v58_v10, %v60_v12  ;;  %68 = vst.msk [vmem:[#allocation2 + $0x10] sm:$0xff] %vm51_vm1, %v60_v12  ;;  %vm167_vm1 = vcmask 900096  }
  0x7d   :  { %v880_v15 = vld [vmem:[#allocation2 + $0x18] sm:$0xff]  ;;  %v883_v18 = vld [vmem:[#allocation2] sm:$0xff] }
  0x7e   :  { %v762_v19 = vpack.i.bf16 %v873_v13, %v883_v18 }
  0x81   :  { %v286_v16 = vld [vmem:[#allocation2 + $0x28] sm:$0xff]  ;;  %v96_v20 = vld [vmem:[#allocation2 + $0x10] sm:$0xff] }
  0x82   :  { %v727_v17 = vpack.i.bf16 %v880_v15, %v286_v16  ;;  %v767_v21 = vpack.i.bf16 %v96_v20, %v877_v14 }
  0x84   :  { %728 = vrot.lane.b32.xlu1 %v727_v17, %s831_s0  ;;  %723 = vrot.lane.b32.xlu0 %v727_v17, %s832_s17 }
  0x88   :  { %738 = vrot.lane.b32.xlu1 %v727_v17, %s833_s18  ;;  %733 = vrot.lane.b32.xlu0 %v727_v17, %s834_s19 }
  0x8c   :  { %748 = vrot.lane.b32.xlu1 %v727_v17, %s835_s20  ;;  %743 = vrot.lane.b32.xlu0 %v727_v17, %s836_s21 }
  0x90   :  { %763 = vrot.lane.b32.xlu1 %v762_v19, %s832_s17  ;;  %753 = vrot.lane.b32.xlu0 %v727_v17, %s837_s22 }
  0x94   :  { %768 = vrot.lane.b32.xlu1 %v767_v21, %s831_s0  ;;  %758 = vrot.lane.b32.xlu0 %v767_v21, %s832_s17 }
  0x98   :  { %778 = vrot.lane.b32.xlu1 %v762_v19, %s831_s0  ;;  %773 = vrot.lane.b32.xlu0 %v767_v21, %s834_s19 }
  0x9c   :  { %788 = vrot.lane.b32.xlu1 %v767_v21, %s833_s18  ;;  %783 = vrot.lane.b32.xlu0 %v762_v19, %s834_s19 }
  0xa0   :  { %798 = vrot.lane.b32.xlu1 %v762_v19, %s833_s18  ;;  %793 = vrot.lane.b32.xlu0 %v767_v21, %s836_s21 }
  0xa4   :  { %808 = vrot.lane.b32.xlu1 %v767_v21, %s835_s20  ;;  %803 = vrot.lane.b32.xlu0 %v762_v19, %s836_s21 }
  0xa8   :  { %818 = vrot.lane.b32.xlu1 %v762_v19, %s835_s20  ;;  %813 = vrot.lane.b32.xlu0 %v767_v21, %s837_s22 }
  0xac   :  { %222 = vrot.lane.b32.xlu1 %v883_v18, %s838_s23  ;;  %823 = vrot.lane.b32.xlu0 %v762_v19, %s837_s22 }
  0xb0   :  { %224 = vrot.lane.b32.xlu1 %v877_v14, %s838_s23  ;;  %226 = vrot.lane.b32.xlu0 %v96_v20, %s838_s23 }
  0xb4   :  { %410 = vrot.lane.b32.xlu1 %v286_v16, %s838_s23  ;;  %408 = vrot.lane.b32.xlu0 %v873_v13, %s838_s23 }
  0xb8   :  { %406 = vrot.lane.b32.xlu0 %v880_v15, %s838_s23 }
  0xf6   :  { %v892_v23 = vpop.permute.xlu1 %728  ;;  %v724_v24 = vpop.permute.xlu0 %723 }
  0xf7   :  { %v726_v36 = vunpack.i.h.bf16 %v724_v24  ;;  %v725_v37 = vunpack.i.l.bf16 %v724_v24  ;;  %v731_v2 = vunpack.i.h.bf16 %v892_v23  ;;  %v730_v3 = vunpack.i.l.bf16 %v892_v23 }
  0xfa   :  { %v894_v26 = vpop.permute.xlu1 %738  ;;  %v896_v27 = vpop.permute.xlu0 %733 }
  0xfb   :  { %v736_v8 = vunpack.i.h.bf16 %v896_v27  ;;  %v735_v9 = vunpack.i.l.bf16 %v896_v27  ;;  %v740_v35 = vunpack.i.l.bf16 %v894_v26 }
  0xfe   :  { %v898_v29 = vpop.permute.xlu1 %748  ;;  %v900_v30 = vpop.permute.xlu0 %743 }
 0x102   :  { %v764_v33 = vpop.permute.xlu1 %763  ;;  %v902_v34 = vpop.permute.xlu0 %753 }
 0x103   :  { %v766_v38 = vunpack.i.h.bf16 %v764_v33  ;;  %v765_v48 = vunpack.i.l.bf16 %v764_v33 }
 0x105   :  { %v279_v40 = vsel %vm87_vm5, %v766_v38, %v725_v37  ;;  %v278_v42 = vsel %vm87_vm5, %v726_v36, %v766_v38  ;;  %v741_v37 = vunpack.i.h.bf16 %v894_v26 }
 0x106   :  { %v769_v43 = vpop.permute.xlu1 %768  ;;  %v759_v44 = vpop.permute.xlu0 %758  ;;  %v687_v45 = vpack.c.bf16 %v279_v40, %v873_v13  ;;  %v690_v47 = vpack.c.bf16 %v278_v42, %v880_v15  ;;  %v746_v42 = vunpack.i.h.bf16 %v900_v30 }
 0x107   :  { %v761_v49 = vunpack.i.h.bf16 %v759_v44  ;;  %v760_v50 = vunpack.i.l.bf16 %v759_v44  ;;  %v771_v51 = vunpack.i.h.bf16 %v769_v43  ;;  %v770_v52 = vunpack.i.l.bf16 %v769_v43 }
 0x108   :  { %689 = vmatprep.subr.msk.bf16.mxu1 %vm916_vm8, %v687_v45  ;;  %v745_v43 = vunpack.i.l.bf16 %v900_v30 }
 0x109   :  { %692 = vmatpush1.bf16.msk.msra.mxu1 %vm925_vm9, %v690_v47  ;;  %v89_v53 = vsel %vm87_vm5, %v760_v50, %v761_v49  ;;  %v88_v54 = vsel %vm87_vm5, %v765_v48, %v760_v50  ;;  %v108_v0 = vsel %vm106_vm10, %v770_v52, %v771_v51  ;;  %vm209_vm5 = vcmask 777216  }
 0x10a   :  { %v779_v55 = vpop.permute.xlu1 %778  ;;  %v774_v56 = vpop.permute.xlu0 %773  ;;  %v663_v57 = vpack.c.bf16 %v89_v53, %v877_v14  ;;  %v666_v58 = vpack.c.bf16 %v88_v54, %v883_v18 }
 0x10b   :  { %v776_v60 = vunpack.i.h.bf16 %v774_v56  ;;  %v775_v61 = vunpack.i.l.bf16 %v774_v56  ;;  %v781_v62 = vunpack.i.h.bf16 %v779_v55  ;;  %v780_v63 = vunpack.i.l.bf16 %v779_v55 }
 0x10c   :  { %665 = vmatprep.subr.msk.bf16.mxu0 %vm916_vm8, %v663_v57 }
 0x10d   :  { %v129_v1 = vsel %vm127_vm11, %v775_v61, %v776_v60  ;;  %668 = vmatpush1.bf16.msk.msra.mxu0 %vm925_vm9, %v666_v58  ;;  %v296_v12 = vsel %vm106_vm10, %v731_v2, %v781_v62  ;;  %v297_v13 = vsel %vm106_vm10, %v781_v62, %v730_v3  ;;  %v107_v14 = vsel %vm106_vm10, %v780_v63, %v770_v52 }
 0x10e   :  { %v669_v4 = vpack.c.bf16 %v129_v1, %v108_v0  ;;  %v789_v5 = vpop.permute.xlu1 %788  ;;  %v784_v6 = vpop.permute.xlu0 %783  ;;  %v751_v1 = vunpack.i.h.bf16 %v898_v29  ;;  %v750_v2 = vunpack.i.l.bf16 %v898_v29 }
 0x10f   :  { %v786_v10 = vunpack.i.h.bf16 %v784_v6  ;;  %v785_v11 = vunpack.i.l.bf16 %v784_v6  ;;  %v791_v15 = vunpack.i.h.bf16 %v789_v5  ;;  %v790_v16 = vunpack.i.l.bf16 %v789_v5 }
 0x110   :  { %671 = vmatprep.subr.msk.bf16.mxu0 %vm670_vm14, %v669_v4  ;;  %v756_v6 = vunpack.i.h.bf16 %v902_v34 }
 0x111   :  { %v128_v17 = vsel %vm127_vm11, %v785_v11, %v775_v61  ;;  %v316_v18 = vsel %vm127_vm11, %v736_v8, %v786_v10  ;;  %v317_v19 = vsel %vm127_vm11, %v786_v10, %v735_v9  ;;  %v150_v32 = vsel %vm148_vm13, %v790_v16, %v791_v15 }
 0x112   :  { %v672_v20 = vpack.c.bf16 %v128_v17, %v107_v14  ;;  %v693_v21 = vpack.c.bf16 %v317_v19, %v297_v13  ;;  %v696_v22 = vpack.c.bf16 %v316_v18, %v296_v12  ;;  %v799_v23 = vpop.permute.xlu1 %798  ;;  %v794_v24 = vpop.permute.xlu0 %793  ;;  %v755_v8 = vunpack.i.l.bf16 %v902_v34 }
 0x113   :  { %v796_v25 = vunpack.i.h.bf16 %v794_v24  ;;  %v795_v27 = vunpack.i.l.bf16 %v794_v24  ;;  %v801_v28 = vunpack.i.h.bf16 %v799_v23  ;;  %v800_v31 = vunpack.i.l.bf16 %v799_v23  ;;  %v420_v23 = vld [vmem:[%s1060_s1] sm:$0xff] }
 0x114   :  { %674 = vmatpush1.bf16.msk.msra.mxu0 %vm673_vm0, %v672_v20  ;;  %695 = vmatprep.subr.msk.bf16.mxu1 %vm670_vm14, %v693_v21 }
 0x115   :  { %v169_v33 = vsel %vm167_vm1, %v795_v27, %v796_v25  ;;  %698 = vmatpush1.bf16.msk.msra.mxu1 %vm673_vm0, %v696_v22  ;;  %v336_v47 = vsel %vm148_vm13, %v741_v37, %v801_v28  ;;  %v337_v48 = vsel %vm148_vm13, %v801_v28, %v740_v35  ;;  %v149_v49 = vsel %vm148_vm13, %v800_v31, %v790_v16 }
 0x116   :  { %v675_v38 = vpack.c.bf16 %v169_v33, %v150_v32  ;;  %v809_v39 = vpop.permute.xlu1 %808  ;;  %v804_v40 = vpop.permute.xlu0 %803 }
 0x117   :  { %v806_v44 = vunpack.i.h.bf16 %v804_v40  ;;  %v805_v45 = vunpack.i.l.bf16 %v804_v40  ;;  %v811_v50 = vunpack.i.h.bf16 %v809_v39  ;;  %v810_v26 = vunpack.i.l.bf16 %v809_v39 }
 0x118   :  { %677 = vmatprep.subr.msk.bf16.mxu0 %vm985_vm2, %v675_v38 }
 0x119   :  { %v168_v51 = vsel %vm167_vm1, %v805_v45, %v795_v27  ;;  %v354_v52 = vsel %vm167_vm1, %v746_v42, %v806_v44  ;;  %v355_v53 = vsel %vm167_vm1, %v806_v44, %v745_v43  ;;  %v190_v62 = vsel %vm188_vm3, %v810_v26, %v811_v50 }
 0x11a   :  { %v678_v30 = vpack.c.bf16 %v168_v51, %v149_v49  ;;  %v699_v54 = vpack.c.bf16 %v355_v53, %v337_v48  ;;  %v702_v55 = vpack.c.bf16 %v354_v52, %v336_v47  ;;  %v819_v56 = vpop.permute.xlu1 %818  ;;  %v814_v57 = vpop.permute.xlu0 %813 }
 0x11b   :  { %v816_v58 = vunpack.i.h.bf16 %v814_v57  ;;  %v815_v60 = vunpack.i.l.bf16 %v814_v57  ;;  %v821_v61 = vunpack.i.h.bf16 %v819_v56  ;;  %v820_v63 = vunpack.i.l.bf16 %v819_v56 }
 0x11c   :  { %680 = vmatpush1.bf16.msk.msra.mxu0 %vm679_vm4, %v678_v30  ;;  %701 = vmatprep.subr.msk.bf16.mxu1 %vm985_vm2, %v699_v54 }
 0x11d   :  { %v211_v0 = vsel %vm209_vm5, %v815_v60, %v816_v58  ;;  %704 = vmatpush1.bf16.msk.msra.mxu1 %vm679_vm4, %v702_v55  ;;  %v374_v11 = vsel %vm188_vm3, %v751_v1, %v821_v61  ;;  %v375_v12 = vsel %vm188_vm3, %v821_v61, %v750_v2  ;;  %v189_v13 = vsel %vm188_vm3, %v820_v63, %v810_v26 }
 0x11e   :  { %v681_v3 = vpack.c.bf16 %v211_v0, %v190_v62  ;;  %v223_v4 = vpop.permute.xlu1 %222  ;;  %v824_v5 = vpop.permute.xlu0 %823 }
 0x11f   :  { %v826_v9 = vunpack.i.h.bf16 %v824_v5  ;;  %v825_v10 = vunpack.i.l.bf16 %v824_v5 }
 0x120   :  { %683 = vmatprep.subr.msk.bf16.mxu0 %vm916_vm8, %v681_v3 }
 0x121   :  { %v210_v29 = vsel %vm209_vm5, %v825_v10, %v815_v60  ;;  %v394_v14 = vsel %vm209_vm5, %v756_v6, %v826_v9  ;;  %v395_v15 = vsel %vm209_vm5, %v826_v9, %v755_v8 }
 0x122   :  { %v684_v16 = vpack.c.bf16 %v210_v29, %v189_v13  ;;  %v705_v34 = vpack.c.bf16 %v395_v15, %v375_v12  ;;  %v708_v17 = vpack.c.bf16 %v394_v14, %v374_v11  ;;  %v225_v18 = vpop.permute.xlu1 %224  ;;  %v227_v19 = vpop.permute.xlu0 %226 }
 0x123   :  { %v230_v20 = vsel %vm228_vm6, %v225_v18, %v227_v19  ;;  %v229_v24 = vsel %vm228_vm6, %v223_v4, %v225_v18 }
 0x124   :  { %686 = vmatpush1.bf16.msk.msra.mxu0 %vm925_vm9, %v684_v16  ;;  %707 = vmatprep.subr.msk.bf16.mxu1 %vm916_vm8, %v705_v34  ;;  %vm613_vm8 = vcmask 7168  }
 0x125   :  { %649 = vmatprep.subr.msk.mxu0 %vm938_vm12, %v230_v20  ;;  %710 = vmatpush1.bf16.msk.msra.mxu1 %vm925_vm9, %v708_v17  ;;  %vm624_vm9 = vcmask 15368  }
 0x126   :  { %v411_v21 = vpop.permute.xlu1 %410  ;;  %v409_v22 = vpop.permute.xlu0 %408 }
 0x127   :  { %v413_v25 = vsel %vm228_vm6, %v409_v22, %v411_v21 }
 0x128   :  { %650 = vmatpush1.msk.msra.mxu0 %vm954_vm15, %v229_v24  ;;  %661 = vmatprep.subr.msk.mxu1 %vm938_vm12, %v413_v25 }
 0x129   :  { %635 = vmatmul.mubr.msk.f32.vlgmr.msra.gmra.mrb[0].mxu0 %vm457_vm7, %v420_v23 }
 0x12a   :  { %v407_v41 = vpop.permute.xlu0 %406 }
 0x12b   :  { %v412_v46 = vsel %vm228_vm6, %v407_v41, %v409_v22 }
 0x12c   :  { %662 = vmatpush1.msk.msra.mxu1 %vm954_vm15, %v412_v46 }
 0x12d   :  { %636 = vmatmul.mubr.msk.f32.vlgmr.msra.gmra.mrb[0].mxu1 %vm457_vm7, %v420_v23 }
 0x1fc   :  { %v527_v27 = vpop.f32.mrb[0].mxu0 }
 0x1fd   :  { %603 = vst [vmem:[%s1061_s2] sm:$0xff] %v527_v27  ;;  %v615_v28 = vmul.f32 %v527_v27, %v527_v27  ;;  %v529_v31 = vpop.f32.mrb[1].mxu0 }
 0x1fe   :  { %604 = vst [vmem:[%s1061_s2 + $0x8] sm:$0xff] %v529_v31  ;;  %v608_v59 = vadd.f32 %v529_v31, %v527_v27  ;;  %v616_v32 = vmul.f32 %v529_v31, %v529_v31 }
 0x200   :  { %v619_v33 = vadd.f32 %v616_v32, %v615_v28  ;;  %v598_v36 = vpop.f32.mrb[0].mxu1 }
 0x201   :  { %637 = vst [vmem:[%s1061_s2 + $0x10] sm:$0xff] %v598_v36  ;;  %v617_v7 = vmul.f32 %v598_v36, %v598_v36  ;;  %v600_v37 = vpop.f32.mrb[1].mxu1  ;;  %v609_v35 = vadd.f32 %v608_v59, %v598_v36 }
 0x202   :  { %638 = vst [vmem:[%s1061_s2 + $0x18] sm:$0xff] %v600_v37  ;;  %v618_v38 = vmul.f32 %v600_v37, %v600_v37 }
 0x203   :  { %v610_v39 = vadd.f32 %v609_v35, %v600_v37  ;;  %v620_v40 = vadd.f32 %v619_v33, %v617_v7 }
 0x205   :  { %611 = vadd.xlane.f32.xlu1 %v610_v39  ;;  %v621_v42 = vadd.f32 %v620_v40, %v618_v38 }
 0x207   :  { %622 = vadd.xlane.f32.xlu0 %v621_v42 }
 0x292   :  { %v612_v43 = vpop.xlane.xlu1 %611 }
 0x293   :  { %614 = vst.msk [vmem:[%s1062_s3] sm:$0xff] %vm613_vm8, %v612_v43 }
 0x294   :  { %v623_v44 = vpop.xlane.xlu0 %622 }
 0x295   :  { %625 = vst.msk [vmem:[%s1062_s3] sm:$0xff] %vm624_vm9, %v623_v44 }

</bundles_post_ra>
